<compile_context>
chip_gen: v6e
topology: v6e:2x2x1
jax: 0.10.0
libtpu: 0.0.40
codegen_flags: <defaults>
</compile_context>

<pallas_src>
import functools
import math

import jax
import jax.numpy as jnp
from jax.experimental import pallas as pl
from jax.experimental.pallas import tpu as pltpu

EPS = 1e-12


def _layernorm(x, w, b):
    # BertLayerNorm: biased variance, eps inside the sqrt.  rsqrt runs on the
    # (otherwise idle) EUP slot; the scale is folded into a single multiply.
    u = jnp.mean(x, axis=-1, keepdims=True)
    xc = x - u
    s = jnp.mean(xc * xc, axis=-1, keepdims=True)
    inv = jax.lax.rsqrt(s + EPS)
    return xc * (inv * w) + b


def ograph_resblock_kernel(
    x_ref, g_ref,
    pre_w_ref, pre_b_ref,
    w1t_ref, b1_ref,
    n1_w_ref, n1_b_ref,
    wg_ref, bg_ref,
    n2_w_ref, n2_b_ref,
    w2t_ref, b2_ref,
    out_ref,
    *, dot_dtype,
):
    m, _ = x_ref.shape               # m = Bblk * N (batch folded into MXU M-dim)
    bblk, n, _ = g_ref.shape
    h_dim = wg_ref.shape[1]

    x = x_ref[...]                   # (M, C) f32, held live for the residual
    # Graph is consumed in its stored dtype; astype is a no-op when it is
    # already stored in dot_dtype upstream (recommended: bf16).
    # TODO(synk): on v7x the graph (values in [0,1]) could be quantized to fp8
    # for the aggregation matmul for another 2x on this operand.
    g = g_ref[...].astype(dot_dtype)

    # pre_norm + relu — f32 elementwise (v5e VPU/EUP have no bf16 datapath).
    h = jax.nn.relu(_layernorm(x, pre_w_ref[...], pre_b_ref[...]))

    # lin1: (M, C) @ (C, H) — bf16 operands on the MXU, f32 accumulation.
    y = jnp.dot(h.astype(dot_dtype), w1t_ref[...].astype(dot_dtype),
                preferred_element_type=jnp.float32) + b1_ref[...]
    y = jax.nn.relu(_layernorm(y, n1_w_ref[...], n1_b_ref[...]))

    # GraphConvolution: graph @ (y @ Wg) + bg
    support = jnp.dot(y.astype(dot_dtype), wg_ref[...].astype(dot_dtype),
                      preferred_element_type=jnp.float32)            # (M, H) f32
    support = support.reshape(bblk, n, h_dim).astype(dot_dtype)      # (Bblk, N, H)
    # TODO(synk): for N << 128 this batched matmul under-fills the MXU K dim;
    # padding N to the MXU granularity or a VPU broadcast-multiply-reduce would
    # use the hardware better.  For N >= 128 the batched einsum is fine as-is.
    agg = jnp.einsum("bnm,bmh->bnh", g, support,
                     preferred_element_type=jnp.float32)             # (Bblk, N, H)
    y = agg.reshape(m, h_dim) + bg_ref[...]
    y = jax.nn.relu(_layernorm(y, n2_w_ref[...], n2_b_ref[...]))

    # lin2: (M, H) @ (H, C)
    y = jnp.dot(y.astype(dot_dtype), w2t_ref[...].astype(dot_dtype),
                preferred_element_type=jnp.float32) + b2_ref[...]

    # residual in f32
    out_ref[...] = x + y


def _vmem_capacity_bytes():
    """Physical VMEM per TensorCore; conservative 64 MiB (v7x) fallback."""
    try:
        info = pltpu.get_tpu_info()
        for attr in ("vmem_capacity_bytes", "vmem_size_bytes", "vmem_bytes"):
            v = getattr(info, attr, None)
            if v:
                return int(v)
    except Exception:
        pass
    return 64 * 1024 * 1024


def _choose_bblk(B, N, C, H, g_itemsize, dot_itemsize, param_bytes, budget):
    """Pick the largest batch block that fits an honest VMEM estimate while
    keeping >= 2 grid steps (v7x megacore) and an 8-aligned sublane extent."""
    feat = max(C, H)

    def estimate(bblk):
        m = bblk * N
        io = 2 * 2 * m * C * 4                      # x & out blocks, double-buffered f32
        gio = 2 * bblk * N * N * g_itemsize         # graph block, double-buffered
        f32_tmp = 5 * m * feat * 4                  # x held for residual + ~4 live f32 temps
        cast_tmp = 3 * m * feat * dot_itemsize + bblk * N * N * dot_itemsize
        return io + gio + f32_tmp + cast_tmp + param_bytes

    granule = 8 // math.gcd(N, 8)                   # keep (bblk*N) % 8 == 0
    max_bblk = B if B <= 1 else (B + 1) // 2        # ensure >= 2 grid steps when B >= 2
    best = None
    for cand in range(granule, max_bblk + 1, granule):
        if estimate(cand) <= budget:
            best = cand
    if best is None:
        if granule <= max_bblk:
            best = granule
        else:
            # Cannot have both >= 2 steps and an 8-aligned block: fall back to a
            # single full-batch block (block == full array dims is always legal).
            return B, 1
    n_steps = -(-B // best)                         # ceil(B / best)
    return best, n_steps


def _param_spec(arr, *, single_buffer):
    nd = arr.ndim
    idx = lambda b, _nd=nd: (0,) * _nd
    if single_buffer:
        try:
            # Grid-invariant blocks: single-buffer to reclaim VMEM for activations.
            return pl.BlockSpec(arr.shape, idx, pipeline_mode=pl.Buffered(1))
        except (AttributeError, TypeError):
            pass
    return pl.BlockSpec(arr.shape, idx)


def ograph_resblock(x, graph, params, *, dot_dtype=jnp.bfloat16):
    """OGraphResBlock forward.  x: (B, N, C) f32; graph: (B, N, N) — store it
    in bf16 upstream to halve the dominant HBM read (no per-call cast here)."""
    B, N, C = x.shape
    H = params["wg"].shape[0]
    # skip_conv is declared in the PyTorch __init__ but never used in forward(),
    # so the residual add requires in_channels == out_channels.
    assert params["w1_t"].shape == (C, H) and params["w2_t"].shape == (H, C), (
        "residual add requires in_channels == out_channels"
    )

    param_arrays = [
        params["pre_w"], params["pre_b"],
        params["w1_t"], params["b1"],
        params["n1_w"], params["n1_b"],
        params["wg"], params["bg"],
        params["n2_w"], params["n2_b"],
        params["w2_t"], params["b2"],
    ]
    param_bytes = sum(int(a.size) * a.dtype.itemsize for a in param_arrays)

    # Generation-aware VMEM budget: 3/4 of physical (48 MiB on v7x's 64 MiB,
    # 96 MiB on v5e/v6e's 128 MiB), with 8 MiB headroom for Mosaic scratch.
    phys = _vmem_capacity_bytes()
    scoped_limit = int(min(112 << 20, max(32 << 20, (phys * 3) // 4)))
    budget = scoped_limit - (8 << 20)

    g_itemsize = jnp.dtype(graph.dtype).itemsize
    dot_itemsize = jnp.dtype(dot_dtype).itemsize
    bblk, n_steps = _choose_bblk(B, N, C, H, g_itemsize, dot_itemsize,
                                 param_bytes, budget)

    # Zero-pad the batch so the grid tiles it exactly (handles non-divisor B;
    # padded rows are inert and sliced off below).
    B_pad = n_steps * bblk
    if B_pad != B:
        pad = B_pad - B
        x = jnp.pad(x, ((0, pad), (0, 0), (0, 0)))
        graph = jnp.pad(graph, ((0, pad), (0, 0), (0, 0)))

    m_blk = bblk * N
    # Fold batch into the matmul M dimension: activations become a dense 2-D slab.
    # TODO(synk): when C < 128 the output lane width is < 128 (masked stores);
    # production configs should use C (and H) as multiples of 128 so the slab is
    # lane-dense and the MXU contraction dims are filled.
    x2d = x.reshape(B_pad * N, C)

    io_spec = pl.BlockSpec((m_blk, C), lambda b: (b, 0))
    g_spec = pl.BlockSpec((bblk, N, N), lambda b: (b, 0, 0))

    kernel = functools.partial(ograph_resblock_kernel, dot_dtype=dot_dtype)

    def run(param_specs):
        return pl.pallas_call(
            kernel,
            out_shape=jax.ShapeDtypeStruct((B_pad * N, C), jnp.float32),
            grid_spec=pltpu.PrefetchScalarGridSpec(
                num_scalar_prefetch=0,
                grid=(n_steps,),
                in_specs=[io_spec, g_spec] + param_specs,
                out_specs=io_spec,
            ),
            compiler_params=pltpu.CompilerParams(
                dimension_semantics=("parallel",),
                vmem_limit_bytes=scoped_limit,
            ),
        )(x2d, graph, *param_arrays)

    try:
        out2d = run([_param_spec(a, single_buffer=True) for a in param_arrays])
    except Exception:
        # Fallback for Pallas versions without pipeline_mode single-buffering.
        out2d = run([_param_spec(a, single_buffer=False) for a in param_arrays])

    out = out2d.reshape(B_pad, N, C)
    return out[:B] if B_pad != B else out


def init_params(key, in_channels, out_channels):
    assert in_channels == out_channels, "residual add requires C_in == C_out"
    C = in_channels
    H = out_channels // 2
    keys = jax.random.split(key, 6)

    # GraphLinear lin1: W (H, C), b (H,)   uniform(-1/(in*out), 1/(in*out))
    w1_std = 1.0 / (C * H)
    w1 = jax.random.uniform(keys[0], (H, C), jnp.float32, -w1_std, w1_std)
    b1 = jax.random.uniform(keys[1], (1, H), jnp.float32, -w1_std, w1_std)

    # GraphConvolution: weight (H, H), bias (H,)  uniform(-stdv, stdv)
    g_std = 6.0 / math.sqrt(H + H)
    wg = jax.random.uniform(keys[2], (H, H), jnp.float32, -g_std, g_std)
    bg = jax.random.uniform(keys[3], (1, H), jnp.float32, -g_std, g_std)

    # GraphLinear lin2: W (C, H), b (C,)
    w2_std = 1.0 / (H * C)
    w2 = jax.random.uniform(keys[4], (C, H), jnp.float32, -w2_std, w2_std)
    b2 = jax.random.uniform(keys[5], (1, C), jnp.float32, -w2_std, w2_std)

    params = {
        "pre_w": jnp.ones((1, C), jnp.float32),
        "pre_b": jnp.zeros((1, C), jnp.float32),
        "w1": w1, "b1": b1,
        "n1_w": jnp.ones((1, H), jnp.float32),
        "n1_b": jnp.zeros((1, H), jnp.float32),
        "wg": wg, "bg": bg,
        "n2_w": jnp.ones((1, H), jnp.float32),
        "n2_b": jnp.zeros((1, H), jnp.float32),
        "w2": w2, "b2": b2,
        # Pre-transposed once here (not per forward call) so the MXU consumes
        # the weights directly.
        "w1_t": jnp.transpose(w1),   # (C, H)
        "w2_t": jnp.transpose(w2),   # (H, C)
    }
    # TODO(synk): skip_conv is declared in the PyTorch __init__ but never used
    # in forward(), so it is intentionally omitted here.
    return params


def reference_forward(x, graph, p):
    def ln(v, w, b):
        u = jnp.mean(v, -1, keepdims=True)
        s = jnp.mean((v - u) ** 2, -1, keepdims=True)
        return w[0] * ((v - u) / jnp.sqrt(s + EPS)) + b[0]

    h = jax.nn.relu(ln(x, p["pre_w"], p["pre_b"]))
    y = jnp.einsum("bnc,hc->bnh", h, p["w1"]) + p["b1"][0]
    y = jax.nn.relu(ln(y, p["n1_w"], p["n1_b"]))
    support = jnp.einsum("bnh,hk->bnk", y, p["wg"])
    y = jnp.einsum("bnm,bmk->bnk", graph, support) + p["bg"][0]
    y = jax.nn.relu(ln(y, p["n2_w"], p["n2_b"]))
    y = jnp.einsum("bnh,ch->bnc", y, p["w2"]) + p["b2"][0]
    return x + y


if __name__ == "__main__":
    B, N, C = 2, 16, 32  # batch, graph nodes, channels (in == out)

    key = jax.random.PRNGKey(0)
    kx, kg, kp = jax.random.split(key, 3)

    x = jax.random.normal(kx, (B, N, C), jnp.float32)
    # dense row-normalized "adjacency" standing in for the sparse graph matrix
    adj = jax.random.uniform(kg, (B, N, N), jnp.float32)
    graph = adj / jnp.sum(adj, axis=-1, keepdims=True)

    params = init_params(kp, C, C)
    ref = reference_forward(x, graph, params)

    # Exact-parity path: f32 matmul operands.
    out_f32 = jax.block_until_ready(
        ograph_resblock(x, graph, params, dot_dtype=jnp.float32))
    assert out_f32.shape == (B, N, C)
    assert jnp.allclose(out_f32, ref, atol=1e-4, rtol=1e-4)

    # Default (bf16-operand) path: graph stored upstream in bf16 so the dominant
    # (B, N, N) HBM read is half width and no per-call cast op is emitted.
    graph_bf16 = graph.astype(jnp.bfloat16)
    out_bf16 = jax.block_until_ready(ograph_resblock(x, graph_bf16, params))
    assert out_bf16.shape == (B, N, C)
    assert jnp.allclose(out_bf16, ref, atol=2e-2, rtol=2e-2)

    print("KERNEL_OK")
</pallas_src>

<mosaic_0001>
module attributes {stable_mosaic.version = 11 : i64} {
  func.func @ograph_resblock_kernel(%arg0: i32, %arg1: memref<16x32xf32, #tpu.memory_space<vmem>>, %arg2: memref<1x16x16xf32, #tpu.memory_space<vmem>>, %arg3: memref<1x32xf32, #tpu.memory_space<vmem>>, %arg4: memref<1x32xf32, #tpu.memory_space<vmem>>, %arg5: memref<32x16xf32, #tpu.memory_space<vmem>>, %arg6: memref<1x16xf32, #tpu.memory_space<vmem>>, %arg7: memref<1x16xf32, #tpu.memory_space<vmem>>, %arg8: memref<1x16xf32, #tpu.memory_space<vmem>>, %arg9: memref<16x16xf32, #tpu.memory_space<vmem>>, %arg10: memref<1x16xf32, #tpu.memory_space<vmem>>, %arg11: memref<1x16xf32, #tpu.memory_space<vmem>>, %arg12: memref<1x16xf32, #tpu.memory_space<vmem>>, %arg13: memref<16x32xf32, #tpu.memory_space<vmem>>, %arg14: memref<1x32xf32, #tpu.memory_space<vmem>>, %arg15: memref<16x32xf32, #tpu.memory_space<vmem>>) attributes {dimension_semantics = [#tpu.dimension_semantics<parallel>], iteration_bounds = array<i64: 2>, scalar_prefetch = 0 : i64, scratch_operands = 0 : i64, tpu.core_type = #tpu.core_type<tc>, window_params = [{transform_indices = @transform_0, window_bounds = array<i64: 16, 32>}, {transform_indices = @transform_1, window_bounds = array<i64: 1, 16, 16>}, {pipeline_mode = #tpu.pipeline_mode<synchronous>, transform_indices = @transform_2, window_bounds = array<i64: 1, 32>}, {pipeline_mode = #tpu.pipeline_mode<synchronous>, transform_indices = @transform_3, window_bounds = array<i64: 1, 32>}, {pipeline_mode = #tpu.pipeline_mode<synchronous>, transform_indices = @transform_4, window_bounds = array<i64: 32, 16>}, {pipeline_mode = #tpu.pipeline_mode<synchronous>, transform_indices = @transform_5, window_bounds = array<i64: 1, 16>}, {pipeline_mode = #tpu.pipeline_mode<synchronous>, transform_indices = @transform_6, window_bounds = array<i64: 1, 16>}, {pipeline_mode = #tpu.pipeline_mode<synchronous>, transform_indices = @transform_7, window_bounds = array<i64: 1, 16>}, {pipeline_mode = #tpu.pipeline_mode<synchronous>, transform_indices = @transform_8, window_bounds = array<i64: 16, 16>}, {pipeline_mode = #tpu.pipeline_mode<synchronous>, transform_indices = @transform_9, window_bounds = array<i64: 1, 16>}, {pipeline_mode = #tpu.pipeline_mode<synchronous>, transform_indices = @transform_10, window_bounds = array<i64: 1, 16>}, {pipeline_mode = #tpu.pipeline_mode<synchronous>, transform_indices = @transform_11, window_bounds = array<i64: 1, 16>}, {pipeline_mode = #tpu.pipeline_mode<synchronous>, transform_indices = @transform_12, window_bounds = array<i64: 16, 32>}, {pipeline_mode = #tpu.pipeline_mode<synchronous>, transform_indices = @transform_13, window_bounds = array<i64: 1, 32>}, {transform_indices = @transform_14, window_bounds = array<i64: 16, 32>}]} {
    %c0 = arith.constant 0 : index
    %c0_0 = arith.constant 0 : index
    %0 = vector.load %arg1[%c0, %c0_0] : memref<16x32xf32, #tpu.memory_space<vmem>>, vector<16x32xf32>
    %c0_1 = arith.constant 0 : index
    %c0_2 = arith.constant 0 : index
    %c0_3 = arith.constant 0 : index
    %1 = vector.load %arg2[%c0_1, %c0_2, %c0_3] : memref<1x16x16xf32, #tpu.memory_space<vmem>>, vector<1x16x16xf32>
    %c0_4 = arith.constant 0 : index
    %c0_5 = arith.constant 0 : index
    %2 = vector.load %arg3[%c0_4, %c0_5] : memref<1x32xf32, #tpu.memory_space<vmem>>, vector<1x32xf32>
    %c0_6 = arith.constant 0 : index
    %c0_7 = arith.constant 0 : index
    %3 = vector.load %arg4[%c0_6, %c0_7] : memref<1x32xf32, #tpu.memory_space<vmem>>, vector<1x32xf32>
    %cst = arith.constant dense<0.000000e+00> : vector<16xf32>
    %4 = vector.multi_reduction <add>, %0, %cst [1] : vector<16x32xf32> to vector<16xf32>
    %5 = vector.shape_cast %4 : vector<16xf32> to vector<16x1xf32>
    %cst_8 = arith.constant 3.200000e+01 : f32
    %6 = vector.broadcast %cst_8 : f32 to vector<16x1xf32>
    %7 = arith.divf %5, %6 : vector<16x1xf32>
    %8 = vector.broadcast %7 : vector<16x1xf32> to vector<16x32xf32>
    %9 = arith.subf %0, %8 : vector<16x32xf32>
    %10 = arith.mulf %9, %9 : vector<16x32xf32>
    %cst_9 = arith.constant dense<0.000000e+00> : vector<16xf32>
    %11 = vector.multi_reduction <add>, %10, %cst_9 [1] : vector<16x32xf32> to vector<16xf32>
    %12 = vector.shape_cast %11 : vector<16xf32> to vector<16x1xf32>
    %cst_10 = arith.constant 3.200000e+01 : f32
    %13 = vector.broadcast %cst_10 : f32 to vector<16x1xf32>
    %14 = arith.divf %12, %13 : vector<16x1xf32>
    %cst_11 = arith.constant 9.99999996E-13 : f32
    %15 = vector.broadcast %cst_11 : f32 to vector<16x1xf32>
    %16 = arith.addf %14, %15 : vector<16x1xf32>
    %17 = math.rsqrt %16 : vector<16x1xf32>
    %18 = vector.broadcast %17 : vector<16x1xf32> to vector<16x32xf32>
    %19 = vector.broadcast %2 : vector<1x32xf32> to vector<16x32xf32>
    %20 = arith.mulf %18, %19 : vector<16x32xf32>
    %21 = arith.mulf %9, %20 : vector<16x32xf32>
    %22 = vector.broadcast %3 : vector<1x32xf32> to vector<16x32xf32>
    %23 = arith.addf %21, %22 : vector<16x32xf32>
    %cst_12 = arith.constant 0.000000e+00 : f32
    %24 = vector.broadcast %cst_12 : f32 to vector<16x32xf32>
    %25 = arith.maximumf %23, %24 : vector<16x32xf32>
    %c0_13 = arith.constant 0 : index
    %c0_14 = arith.constant 0 : index
    %26 = vector.load %arg5[%c0_13, %c0_14] : memref<32x16xf32, #tpu.memory_space<vmem>>, vector<32x16xf32>
    %cst_15 = arith.constant dense<0.000000e+00> : vector<16x16xf32>
    %27 = tpu.matmul %25, %26, %cst_15 {dimension_numbers = #tpu.dot_dimension_numbers<[1], [0], [0], [1], [0, 0, 1, 1], [], []>} : vector<16x32xf32>, vector<32x16xf32>, vector<16x16xf32> -> vector<16x16xf32>
    %c0_16 = arith.constant 0 : index
    %c0_17 = arith.constant 0 : index
    %28 = vector.load %arg6[%c0_16, %c0_17] : memref<1x16xf32, #tpu.memory_space<vmem>>, vector<1x16xf32>
    %29 = vector.broadcast %28 : vector<1x16xf32> to vector<16x16xf32>
    %30 = arith.addf %27, %29 : vector<16x16xf32>
    %c0_18 = arith.constant 0 : index
    %c0_19 = arith.constant 0 : index
    %31 = vector.load %arg7[%c0_18, %c0_19] : memref<1x16xf32, #tpu.memory_space<vmem>>, vector<1x16xf32>
    %c0_20 = arith.constant 0 : index
    %c0_21 = arith.constant 0 : index
    %32 = vector.load %arg8[%c0_20, %c0_21] : memref<1x16xf32, #tpu.memory_space<vmem>>, vector<1x16xf32>
    %cst_22 = arith.constant dense<0.000000e+00> : vector<16xf32>
    %33 = vector.multi_reduction <add>, %30, %cst_22 [1] : vector<16x16xf32> to vector<16xf32>
    %34 = vector.shape_cast %33 : vector<16xf32> to vector<16x1xf32>
    %cst_23 = arith.constant 1.600000e+01 : f32
    %35 = vector.broadcast %cst_23 : f32 to vector<16x1xf32>
    %36 = arith.divf %34, %35 : vector<16x1xf32>
    %37 = vector.broadcast %36 : vector<16x1xf32> to vector<16x16xf32>
    %38 = arith.subf %30, %37 : vector<16x16xf32>
    %39 = arith.mulf %38, %38 : vector<16x16xf32>
    %cst_24 = arith.constant dense<0.000000e+00> : vector<16xf32>
    %40 = vector.multi_reduction <add>, %39, %cst_24 [1] : vector<16x16xf32> to vector<16xf32>
    %41 = vector.shape_cast %40 : vector<16xf32> to vector<16x1xf32>
    %cst_25 = arith.constant 1.600000e+01 : f32
    %42 = vector.broadcast %cst_25 : f32 to vector<16x1xf32>
    %43 = arith.divf %41, %42 : vector<16x1xf32>
    %cst_26 = arith.constant 9.99999996E-13 : f32
    %44 = vector.broadcast %cst_26 : f32 to vector<16x1xf32>
    %45 = arith.addf %43, %44 : vector<16x1xf32>
    %46 = math.rsqrt %45 : vector<16x1xf32>
    %47 = vector.broadcast %46 : vector<16x1xf32> to vector<16x16xf32>
    %48 = vector.broadcast %31 : vector<1x16xf32> to vector<16x16xf32>
    %49 = arith.mulf %47, %48 : vector<16x16xf32>
    %50 = arith.mulf %38, %49 : vector<16x16xf32>
    %51 = vector.broadcast %32 : vector<1x16xf32> to vector<16x16xf32>
    %52 = arith.addf %50, %51 : vector<16x16xf32>
    %cst_27 = arith.constant 0.000000e+00 : f32
    %53 = vector.broadcast %cst_27 : f32 to vector<16x16xf32>
    %54 = arith.maximumf %52, %53 : vector<16x16xf32>
    %c0_28 = arith.constant 0 : index
    %c0_29 = arith.constant 0 : index
    %55 = vector.load %arg9[%c0_28, %c0_29] : memref<16x16xf32, #tpu.memory_space<vmem>>, vector<16x16xf32>
    %cst_30 = arith.constant dense<0.000000e+00> : vector<16x16xf32>
    %56 = tpu.matmul %54, %55, %cst_30 {dimension_numbers = #tpu.dot_dimension_numbers<[1], [0], [0], [1], [0, 0, 1, 1], [], []>} : vector<16x16xf32>, vector<16x16xf32>, vector<16x16xf32> -> vector<16x16xf32>
    %57 = vector.shape_cast %56 : vector<16x16xf32> to vector<1x16x16xf32>
    "tpu.trace_start"() <{level = 10 : i32, message = "bnm,bmh->bnh"}> : () -> ()
    %cst_31 = arith.constant dense<0.000000e+00> : vector<1x16x16xf32>
    %58 = tpu.matmul %1, %57, %cst_31 {dimension_numbers = #tpu.dot_dimension_numbers<[2], [1], [1], [2], [0, 0, 0, 1, 1, 2], [0], [0]>} : vector<1x16x16xf32>, vector<1x16x16xf32>, vector<1x16x16xf32> -> vector<1x16x16xf32>
    "tpu.trace_stop"() : () -> ()
    %59 = vector.shape_cast %58 : vector<1x16x16xf32> to vector<16x16xf32>
    %c0_32 = arith.constant 0 : index
    %c0_33 = arith.constant 0 : index
    %60 = vector.load %arg10[%c0_32, %c0_33] : memref<1x16xf32, #tpu.memory_space<vmem>>, vector<1x16xf32>
    %61 = vector.broadcast %60 : vector<1x16xf32> to vector<16x16xf32>
    %62 = arith.addf %59, %61 : vector<16x16xf32>
    %c0_34 = arith.constant 0 : index
    %c0_35 = arith.constant 0 : index
    %63 = vector.load %arg11[%c0_34, %c0_35] : memref<1x16xf32, #tpu.memory_space<vmem>>, vector<1x16xf32>
    %c0_36 = arith.constant 0 : index
    %c0_37 = arith.constant 0 : index
    %64 = vector.load %arg12[%c0_36, %c0_37] : memref<1x16xf32, #tpu.memory_space<vmem>>, vector<1x16xf32>
    %cst_38 = arith.constant dense<0.000000e+00> : vector<16xf32>
    %65 = vector.multi_reduction <add>, %62, %cst_38 [1] : vector<16x16xf32> to vector<16xf32>
    %66 = vector.shape_cast %65 : vector<16xf32> to vector<16x1xf32>
    %cst_39 = arith.constant 1.600000e+01 : f32
    %67 = vector.broadcast %cst_39 : f32 to vector<16x1xf32>
    %68 = arith.divf %66, %67 : vector<16x1xf32>
    %69 = vector.broadcast %68 : vector<16x1xf32> to vector<16x16xf32>
    %70 = arith.subf %62, %69 : vector<16x16xf32>
    %71 = arith.mulf %70, %70 : vector<16x16xf32>
    %cst_40 = arith.constant dense<0.000000e+00> : vector<16xf32>
    %72 = vector.multi_reduction <add>, %71, %cst_40 [1] : vector<16x16xf32> to vector<16xf32>
    %73 = vector.shape_cast %72 : vector<16xf32> to vector<16x1xf32>
    %cst_41 = arith.constant 1.600000e+01 : f32
    %74 = vector.broadcast %cst_41 : f32 to vector<16x1xf32>
    %75 = arith.divf %73, %74 : vector<16x1xf32>
    %cst_42 = arith.constant 9.99999996E-13 : f32
    %76 = vector.broadcast %cst_42 : f32 to vector<16x1xf32>
    %77 = arith.addf %75, %76 : vector<16x1xf32>
    %78 = math.rsqrt %77 : vector<16x1xf32>
    %79 = vector.broadcast %78 : vector<16x1xf32> to vector<16x16xf32>
    %80 = vector.broadcast %63 : vector<1x16xf32> to vector<16x16xf32>
    %81 = arith.mulf %79, %80 : vector<16x16xf32>
    %82 = arith.mulf %70, %81 : vector<16x16xf32>
    %83 = vector.broadcast %64 : vector<1x16xf32> to vector<16x16xf32>
    %84 = arith.addf %82, %83 : vector<16x16xf32>
    %cst_43 = arith.constant 0.000000e+00 : f32
    %85 = vector.broadcast %cst_43 : f32 to vector<16x16xf32>
    %86 = arith.maximumf %84, %85 : vector<16x16xf32>
    %c0_44 = arith.constant 0 : index
    %c0_45 = arith.constant 0 : index
    %87 = vector.load %arg13[%c0_44, %c0_45] : memref<16x32xf32, #tpu.memory_space<vmem>>, vector<16x32xf32>
    %cst_46 = arith.constant dense<0.000000e+00> : vector<16x32xf32>
    %88 = tpu.matmul %86, %87, %cst_46 {dimension_numbers = #tpu.dot_dimension_numbers<[1], [0], [0], [1], [0, 0, 1, 1], [], []>} : vector<16x16xf32>, vector<16x32xf32>, vector<16x32xf32> -> vector<16x32xf32>
    %c0_47 = arith.constant 0 : index
    %c0_48 = arith.constant 0 : index
    %89 = vector.load %arg14[%c0_47, %c0_48] : memref<1x32xf32, #tpu.memory_space<vmem>>, vector<1x32xf32>
    %90 = vector.broadcast %89 : vector<1x32xf32> to vector<16x32xf32>
    %91 = arith.addf %88, %90 : vector<16x32xf32>
    %92 = arith.addf %0, %91 : vector<16x32xf32>
    %c0_49 = arith.constant 0 : index
    %c0_50 = arith.constant 0 : index
    %93 = vector.load %arg15[%c0_49, %c0_50] : memref<16x32xf32, #tpu.memory_space<vmem>>, vector<16x32xf32>
    tpu.vector_store %arg15[%c0_49, %c0_50], %92 {strides = array<i32>} : memref<16x32xf32, #tpu.memory_space<vmem>>, vector<16x32xf32>,
    return
  }
  func.func @transform_0(%arg0: i32) -> (i32, i32) {
    %c0_i32 = arith.constant 0 : i32
    %c0_i32_0 = arith.constant 0 : i32
    return %arg0, %c0_i32 : i32, i32
  }
  func.func @transform_1(%arg0: i32) -> (i32, i32, i32) {
    %c0_i32 = arith.constant 0 : i32
    %c0_i32_0 = arith.constant 0 : i32
    %c0_i32_1 = arith.constant 0 : i32
    return %arg0, %c0_i32, %c0_i32_0 : i32, i32, i32
  }
  func.func @transform_2(%arg0: i32) -> (i32, i32) {
    %c0_i32 = arith.constant 0 : i32
    %c0_i32_0 = arith.constant 0 : i32
    %c0_i32_1 = arith.constant 0 : i32
    return %c0_i32, %c0_i32_0 : i32, i32
  }
  func.func @transform_3(%arg0: i32) -> (i32, i32) {
    %c0_i32 = arith.constant 0 : i32
    %c0_i32_0 = arith.constant 0 : i32
    %c0_i32_1 = arith.constant 0 : i32
    return %c0_i32, %c0_i32_0 : i32, i32
  }
  func.func @transform_4(%arg0: i32) -> (i32, i32) {
    %c0_i32 = arith.constant 0 : i32
    %c0_i32_0 = arith.constant 0 : i32
    %c0_i32_1 = arith.constant 0 : i32
    return %c0_i32, %c0_i32_0 : i32, i32
  }
  func.func @transform_5(%arg0: i32) -> (i32, i32) {
    %c0_i32 = arith.constant 0 : i32
    %c0_i32_0 = arith.constant 0 : i32
    %c0_i32_1 = arith.constant 0 : i32
    return %c0_i32, %c0_i32_0 : i32, i32
  }
  func.func @transform_6(%arg0: i32) -> (i32, i32) {
    %c0_i32 = arith.constant 0 : i32
    %c0_i32_0 = arith.constant 0 : i32
    %c0_i32_1 = arith.constant 0 : i32
    return %c0_i32, %c0_i32_0 : i32, i32
  }
  func.func @transform_7(%arg0: i32) -> (i32, i32) {
    %c0_i32 = arith.constant 0 : i32
    %c0_i32_0 = arith.constant 0 : i32
    %c0_i32_1 = arith.constant 0 : i32
    return %c0_i32, %c0_i32_0 : i32, i32
  }
  func.func @transform_8(%arg0: i32) -> (i32, i32) {
    %c0_i32 = arith.constant 0 : i32
    %c0_i32_0 = arith.constant 0 : i32
    %c0_i32_1 = arith.constant 0 : i32
    return %c0_i32, %c0_i32_0 : i32, i32
  }
  func.func @transform_9(%arg0: i32) -> (i32, i32) {
    %c0_i32 = arith.constant 0 : i32
    %c0_i32_0 = arith.constant 0 : i32
    %c0_i32_1 = arith.constant 0 : i32
    return %c0_i32, %c0_i32_0 : i32, i32
  }
  func.func @transform_10(%arg0: i32) -> (i32, i32) {
    %c0_i32 = arith.constant 0 : i32
    %c0_i32_0 = arith.constant 0 : i32
    %c0_i32_1 = arith.constant 0 : i32
    return %c0_i32, %c0_i32_0 : i32, i32
  }
  func.func @transform_11(%arg0: i32) -> (i32, i32) {
    %c0_i32 = arith.constant 0 : i32
    %c0_i32_0 = arith.constant 0 : i32
    %c0_i32_1 = arith.constant 0 : i32
    return %c0_i32, %c0_i32_0 : i32, i32
  }
  func.func @transform_12(%arg0: i32) -> (i32, i32) {
    %c0_i32 = arith.constant 0 : i32
    %c0_i32_0 = arith.constant 0 : i32
    %c0_i32_1 = arith.constant 0 : i32
    return %c0_i32, %c0_i32_0 : i32, i32
  }
  func.func @transform_13(%arg0: i32) -> (i32, i32) {
    %c0_i32 = arith.constant 0 : i32
    %c0_i32_0 = arith.constant 0 : i32
    %c0_i32_1 = arith.constant 0 : i32
    return %c0_i32, %c0_i32_0 : i32, i32
  }
  func.func @transform_14(%arg0: i32) -> (i32, i32) {
    %c0_i32 = arith.constant 0 : i32
    %c0_i32_0 = arith.constant 0 : i32
    return %arg0, %c0_i32 : i32, i32
  }
}

module attributes {stable_mosaic.version = 11 : i64} {
  func.func @ograph_resblock_kernel(%arg0: i32, %arg1: memref<16x32xf32, #tpu.memory_space<vmem>>, %arg2: memref<1x16x16xf32, #tpu.memory_space<vmem>>, %arg3: memref<1x32xf32, #tpu.memory_space<vmem>>, %arg4: memref<1x32xf32, #tpu.memory_space<vmem>>, %arg5: memref<32x16xf32, #tpu.memory_space<vmem>>, %arg6: memref<1x16xf32, #tpu.memory_space<vmem>>, %arg7: memref<1x16xf32, #tpu.memory_space<vmem>>, %arg8: memref<1x16xf32, #tpu.memory_space<vmem>>, %arg9: memref<16x16xf32, #tpu.memory_space<vmem>>, %arg10: memref<1x16xf32, #tpu.memory_space<vmem>>, %arg11: memref<1x16xf32, #tpu.memory_space<vmem>>, %arg12: memref<1x16xf32, #tpu.memory_space<vmem>>, %arg13: memref<16x32xf32, #tpu.memory_space<vmem>>, %arg14: memref<1x32xf32, #tpu.memory_space<vmem>>, %arg15: memref<16x32xf32, #tpu.memory_space<vmem>>) attributes {dimension_semantics = [#tpu.dimension_semantics<parallel>], iteration_bounds = array<i64: 2>, scalar_prefetch = 0 : i64, scratch_operands = 0 : i64, tpu.core_type = #tpu.core_type<tc>, window_params = [{transform_indices = @transform_0, window_bounds = array<i64: 16, 32>}, {transform_indices = @transform_1, window_bounds = array<i64: 1, 16, 16>}, {pipeline_mode = #tpu.pipeline_mode<synchronous>, transform_indices = @transform_2, window_bounds = array<i64: 1, 32>}, {pipeline_mode = #tpu.pipeline_mode<synchronous>, transform_indices = @transform_3, window_bounds = array<i64: 1, 32>}, {pipeline_mode = #tpu.pipeline_mode<synchronous>, transform_indices = @transform_4, window_bounds = array<i64: 32, 16>}, {pipeline_mode = #tpu.pipeline_mode<synchronous>, transform_indices = @transform_5, window_bounds = array<i64: 1, 16>}, {pipeline_mode = #tpu.pipeline_mode<synchronous>, transform_indices = @transform_6, window_bounds = array<i64: 1, 16>}, {pipeline_mode = #tpu.pipeline_mode<synchronous>, transform_indices = @transform_7, window_bounds = array<i64: 1, 16>}, {pipeline_mode = #tpu.pipeline_mode<synchronous>, transform_indices = @transform_8, window_bounds = array<i64: 16, 16>}, {pipeline_mode = #tpu.pipeline_mode<synchronous>, transform_indices = @transform_9, window_bounds = array<i64: 1, 16>}, {pipeline_mode = #tpu.pipeline_mode<synchronous>, transform_indices = @transform_10, window_bounds = array<i64: 1, 16>}, {pipeline_mode = #tpu.pipeline_mode<synchronous>, transform_indices = @transform_11, window_bounds = array<i64: 1, 16>}, {pipeline_mode = #tpu.pipeline_mode<synchronous>, transform_indices = @transform_12, window_bounds = array<i64: 16, 32>}, {pipeline_mode = #tpu.pipeline_mode<synchronous>, transform_indices = @transform_13, window_bounds = array<i64: 1, 32>}, {transform_indices = @transform_14, window_bounds = array<i64: 16, 32>}]} {
    %c0 = arith.constant 0 : index
    %c0_0 = arith.constant 0 : index
    %0 = vector.load %arg1[%c0, %c0_0] : memref<16x32xf32, #tpu.memory_space<vmem>>, vector<16x32xf32>
    %c0_1 = arith.constant 0 : index
    %c0_2 = arith.constant 0 : index
    %c0_3 = arith.constant 0 : index
    %1 = vector.load %arg2[%c0_1, %c0_2, %c0_3] : memref<1x16x16xf32, #tpu.memory_space<vmem>>, vector<1x16x16xf32>
    %c0_4 = arith.constant 0 : index
    %c0_5 = arith.constant 0 : index
    %2 = vector.load %arg3[%c0_4, %c0_5] : memref<1x32xf32, #tpu.memory_space<vmem>>, vector<1x32xf32>
    %c0_6 = arith.constant 0 : index
    %c0_7 = arith.constant 0 : index
    %3 = vector.load %arg4[%c0_6, %c0_7] : memref<1x32xf32, #tpu.memory_space<vmem>>, vector<1x32xf32>
    %cst = arith.constant dense<0.000000e+00> : vector<16xf32>
    %4 = vector.multi_reduction <add>, %0, %cst [1] : vector<16x32xf32> to vector<16xf32>
    %5 = vector.shape_cast %4 : vector<16xf32> to vector<16x1xf32>
    %cst_8 = arith.constant 3.200000e+01 : f32
    %6 = vector.broadcast %cst_8 : f32 to vector<16x1xf32>
    %7 = arith.divf %5, %6 : vector<16x1xf32>
    %8 = vector.broadcast %7 : vector<16x1xf32> to vector<16x32xf32>
    %9 = arith.subf %0, %8 : vector<16x32xf32>
    %10 = arith.mulf %9, %9 : vector<16x32xf32>
    %cst_9 = arith.constant dense<0.000000e+00> : vector<16xf32>
    %11 = vector.multi_reduction <add>, %10, %cst_9 [1] : vector<16x32xf32> to vector<16xf32>
    %12 = vector.shape_cast %11 : vector<16xf32> to vector<16x1xf32>
    %cst_10 = arith.constant 3.200000e+01 : f32
    %13 = vector.broadcast %cst_10 : f32 to vector<16x1xf32>
    %14 = arith.divf %12, %13 : vector<16x1xf32>
    %cst_11 = arith.constant 9.99999996E-13 : f32
    %15 = vector.broadcast %cst_11 : f32 to vector<16x1xf32>
    %16 = arith.addf %14, %15 : vector<16x1xf32>
    %17 = math.rsqrt %16 : vector<16x1xf32>
    %18 = vector.broadcast %17 : vector<16x1xf32> to vector<16x32xf32>
    %19 = vector.broadcast %2 : vector<1x32xf32> to vector<16x32xf32>
    %20 = arith.mulf %18, %19 : vector<16x32xf32>
    %21 = arith.mulf %9, %20 : vector<16x32xf32>
    %22 = vector.broadcast %3 : vector<1x32xf32> to vector<16x32xf32>
    %23 = arith.addf %21, %22 : vector<16x32xf32>
    %cst_12 = arith.constant 0.000000e+00 : f32
    %24 = vector.broadcast %cst_12 : f32 to vector<16x32xf32>
    %25 = arith.maximumf %23, %24 : vector<16x32xf32>
    %c0_13 = arith.constant 0 : index
    %c0_14 = arith.constant 0 : index
    %26 = vector.load %arg5[%c0_13, %c0_14] : memref<32x16xf32, #tpu.memory_space<vmem>>, vector<32x16xf32>
    %cst_15 = arith.constant dense<0.000000e+00> : vector<16x16xf32>
    %27 = tpu.matmul %25, %26, %cst_15 {dimension_numbers = #tpu.dot_dimension_numbers<[1], [0], [0], [1], [0, 0, 1, 1], [], []>} : vector<16x32xf32>, vector<32x16xf32>, vector<16x16xf32> -> vector<16x16xf32>
    %c0_16 = arith.constant 0 : index
    %c0_17 = arith.constant 0 : index
    %28 = vector.load %arg6[%c0_16, %c0_17] : memref<1x16xf32, #tpu.memory_space<vmem>>, vector<1x16xf32>
    %29 = vector.broadcast %28 : vector<1x16xf32> to vector<16x16xf32>
    %30 = arith.addf %27, %29 : vector<16x16xf32>
    %c0_18 = arith.constant 0 : index
    %c0_19 = arith.constant 0 : index
    %31 = vector.load %arg7[%c0_18, %c0_19] : memref<1x16xf32, #tpu.memory_space<vmem>>, vector<1x16xf32>
    %c0_20 = arith.constant 0 : index
    %c0_21 = arith.constant 0 : index
    %32 = vector.load %arg8[%c0_20, %c0_21] : memref<1x16xf32, #tpu.memory_space<vmem>>, vector<1x16xf32>
    %cst_22 = arith.constant dense<0.000000e+00> : vector<16xf32>
    %33 = vector.multi_reduction <add>, %30, %cst_22 [1] : vector<16x16xf32> to vector<16xf32>
    %34 = vector.shape_cast %33 : vector<16xf32> to vector<16x1xf32>
    %cst_23 = arith.constant 1.600000e+01 : f32
    %35 = vector.broadcast %cst_23 : f32 to vector<16x1xf32>
    %36 = arith.divf %34, %35 : vector<16x1xf32>
    %37 = vector.broadcast %36 : vector<16x1xf32> to vector<16x16xf32>
    %38 = arith.subf %30, %37 : vector<16x16xf32>
    %39 = arith.mulf %38, %38 : vector<16x16xf32>
    %cst_24 = arith.constant dense<0.000000e+00> : vector<16xf32>
    %40 = vector.multi_reduction <add>, %39, %cst_24 [1] : vector<16x16xf32> to vector<16xf32>
    %41 = vector.shape_cast %40 : vector<16xf32> to vector<16x1xf32>
    %cst_25 = arith.constant 1.600000e+01 : f32
    %42 = vector.broadcast %cst_25 : f32 to vector<16x1xf32>
    %43 = arith.divf %41, %42 : vector<16x1xf32>
    %cst_26 = arith.constant 9.99999996E-13 : f32
    %44 = vector.broadcast %cst_26 : f32 to vector<16x1xf32>
    %45 = arith.addf %43, %44 : vector<16x1xf32>
    %46 = math.rsqrt %45 : vector<16x1xf32>
    %47 = vector.broadcast %46 : vector<16x1xf32> to vector<16x16xf32>
    %48 = vector.broadcast %31 : vector<1x16xf32> to vector<16x16xf32>
    %49 = arith.mulf %47, %48 : vector<16x16xf32>
    %50 = arith.mulf %38, %49 : vector<16x16xf32>
    %51 = vector.broadcast %32 : vector<1x16xf32> to vector<16x16xf32>
    %52 = arith.addf %50, %51 : vector<16x16xf32>
    %cst_27 = arith.constant 0.000000e+00 : f32
    %53 = vector.broadcast %cst_27 : f32 to vector<16x16xf32>
    %54 = arith.maximumf %52, %53 : vector<16x16xf32>
    %c0_28 = arith.constant 0 : index
    %c0_29 = arith.constant 0 : index
    %55 = vector.load %arg9[%c0_28, %c0_29] : memref<16x16xf32, #tpu.memory_space<vmem>>, vector<16x16xf32>
    %cst_30 = arith.constant dense<0.000000e+00> : vector<16x16xf32>
    %56 = tpu.matmul %54, %55, %cst_30 {dimension_numbers = #tpu.dot_dimension_numbers<[1], [0], [0], [1], [0, 0, 1, 1], [], []>} : vector<16x16xf32>, vector<16x16xf32>, vector<16x16xf32> -> vector<16x16xf32>
    %57 = vector.shape_cast %56 : vector<16x16xf32> to vector<1x16x16xf32>
    "tpu.trace_start"() <{level = 10 : i32, message = "bnm,bmh->bnh"}> : () -> ()
    %cst_31 = arith.constant dense<0.000000e+00> : vector<1x16x16xf32>
    %58 = tpu.matmul %1, %57, %cst_31 {dimension_numbers = #tpu.dot_dimension_numbers<[2], [1], [1], [2], [0, 0, 0, 1, 1, 2], [0], [0]>} : vector<1x16x16xf32>, vector<1x16x16xf32>, vector<1x16x16xf32> -> vector<1x16x16xf32>
    "tpu.trace_stop"() : () -> ()
    %59 = vector.shape_cast %58 : vector<1x16x16xf32> to vector<16x16xf32>
    %c0_32 = arith.constant 0 : index
    %c0_33 = arith.constant 0 : index
    %60 = vector.load %arg10[%c0_32, %c0_33] : memref<1x16xf32, #tpu.memory_space<vmem>>, vector<1x16xf32>
    %61 = vector.broadcast %60 : vector<1x16xf32> to vector<16x16xf32>
    %62 = arith.addf %59, %61 : vector<16x16xf32>
    %c0_34 = arith.constant 0 : index
    %c0_35 = arith.constant 0 : index
    %63 = vector.load %arg11[%c0_34, %c0_35] : memref<1x16xf32, #tpu.memory_space<vmem>>, vector<1x16xf32>
    %c0_36 = arith.constant 0 : index
    %c0_37 = arith.constant 0 : index
    %64 = vector.load %arg12[%c0_36, %c0_37] : memref<1x16xf32, #tpu.memory_space<vmem>>, vector<1x16xf32>
    %cst_38 = arith.constant dense<0.000000e+00> : vector<16xf32>
    %65 = vector.multi_reduction <add>, %62, %cst_38 [1] : vector<16x16xf32> to vector<16xf32>
    %66 = vector.shape_cast %65 : vector<16xf32> to vector<16x1xf32>
    %cst_39 = arith.constant 1.600000e+01 : f32
    %67 = vector.broadcast %cst_39 : f32 to vector<16x1xf32>
    %68 = arith.divf %66, %67 : vector<16x1xf32>
    %69 = vector.broadcast %68 : vector<16x1xf32> to vector<16x16xf32>
    %70 = arith.subf %62, %69 : vector<16x16xf32>
    %71 = arith.mulf %70, %70 : vector<16x16xf32>
    %cst_40 = arith.constant dense<0.000000e+00> : vector<16xf32>
    %72 = vector.multi_reduction <add>, %71, %cst_40 [1] : vector<16x16xf32> to vector<16xf32>
    %73 = vector.shape_cast %72 : vector<16xf32> to vector<16x1xf32>
    %cst_41 = arith.constant 1.600000e+01 : f32
    %74 = vector.broadcast %cst_41 : f32 to vector<16x1xf32>
    %75 = arith.divf %73, %74 : vector<16x1xf32>
    %cst_42 = arith.constant 9.99999996E-13 : f32
    %76 = vector.broadcast %cst_42 : f32 to vector<16x1xf32>
    %77 = arith.addf %75, %76 : vector<16x1xf32>
    %78 = math.rsqrt %77 : vector<16x1xf32>
    %79 = vector.broadcast %78 : vector<16x1xf32> to vector<16x16xf32>
    %80 = vector.broadcast %63 : vector<1x16xf32> to vector<16x16xf32>
    %81 = arith.mulf %79, %80 : vector<16x16xf32>
    %82 = arith.mulf %70, %81 : vector<16x16xf32>
    %83 = vector.broadcast %64 : vector<1x16xf32> to vector<16x16xf32>
    %84 = arith.addf %82, %83 : vector<16x16xf32>
    %cst_43 = arith.constant 0.000000e+00 : f32
    %85 = vector.broadcast %cst_43 : f32 to vector<16x16xf32>
    %86 = arith.maximumf %84, %85 : vector<16x16xf32>
    %c0_44 = arith.constant 0 : index
    %c0_45 = arith.constant 0 : index
    %87 = vector.load %arg13[%c0_44, %c0_45] : memref<16x32xf32, #tpu.memory_space<vmem>>, vector<16x32xf32>
    %cst_46 = arith.constant dense<0.000000e+00> : vector<16x32xf32>
    %88 = tpu.matmul %86, %87, %cst_46 {dimension_numbers = #tpu.dot_dimension_numbers<[1], [0], [0], [1], [0, 0, 1, 1], [], []>} : vector<16x16xf32>, vector<16x32xf32>, vector<16x32xf32> -> vector<16x32xf32>
    %c0_47 = arith.constant 0 : index
    %c0_48 = arith.constant 0 : index
    %89 = vector.load %arg14[%c0_47, %c0_48] : memref<1x32xf32, #tpu.memory_space<vmem>>, vector<1x32xf32>
    %90 = vector.broadcast %89 : vector<1x32xf32> to vector<16x32xf32>
    %91 = arith.addf %88, %90 : vector<16x32xf32>
    %92 = arith.addf %0, %91 : vector<16x32xf32>
    %c0_49 = arith.constant 0 : index
    %c0_50 = arith.constant 0 : index
    %93 = vector.load %arg15[%c0_49, %c0_50] : memref<16x32xf32, #tpu.memory_space<vmem>>, vector<16x32xf32>
    tpu.vector_store %arg15[%c0_49, %c0_50], %92 {strides = array<i32>} : memref<16x32xf32, #tpu.memory_space<vmem>>, vector<16x32xf32>,
    return
  }
  func.func @transform_0(%arg0: i32) -> (i32, i32) {
    %c0_i32 = arith.constant 0 : i32
    %c0_i32_0 = arith.constant 0 : i32
    return %arg0, %c0_i32 : i32, i32
  }
  func.func @transform_1(%arg0: i32) -> (i32, i32, i32) {
    %c0_i32 = arith.constant 0 : i32
    %c0_i32_0 = arith.constant 0 : i32
    %c0_i32_1 = arith.constant 0 : i32
    return %arg0, %c0_i32, %c0_i32_0 : i32, i32, i32
  }
  func.func @transform_2(%arg0: i32) -> (i32, i32) {
    %c0_i32 = arith.constant 0 : i32
    %c0_i32_0 = arith.constant 0 : i32
    %c0_i32_1 = arith.constant 0 : i32
    return %c0_i32, %c0_i32_0 : i32, i32
  }
  func.func @transform_3(%arg0: i32) -> (i32, i32) {
    %c0_i32 = arith.constant 0 : i32
    %c0_i32_0 = arith.constant 0 : i32
    %c0_i32_1 = arith.constant 0 : i32
    return %c0_i32, %c0_i32_0 : i32, i32
  }
  func.func @transform_4(%arg0: i32) -> (i32, i32) {
    %c0_i32 = arith.constant 0 : i32
    %c0_i32_0 = arith.constant 0 : i32
    %c0_i32_1 = arith.constant 0 : i32
    return %c0_i32, %c0_i32_0 : i32, i32
  }
  func.func @transform_5(%arg0: i32) -> (i32, i32) {
    %c0_i32 = arith.constant 0 : i32
    %c0_i32_0 = arith.constant 0 : i32
    %c0_i32_1 = arith.constant 0 : i32
    return %c0_i32, %c0_i32_0 : i32, i32
  }
  func.func @transform_6(%arg0: i32) -> (i32, i32) {
    %c0_i32 = arith.constant 0 : i32
    %c0_i32_0 = arith.constant 0 : i32
    %c0_i32_1 = arith.constant 0 : i32
    return %c0_i32, %c0_i32_0 : i32, i32
  }
  func.func @transform_7(%arg0: i32) -> (i32, i32) {
    %c0_i32 = arith.constant 0 : i32
    %c0_i32_0 = arith.constant 0 : i32
    %c0_i32_1 = arith.constant 0 : i32
    return %c0_i32, %c0_i32_0 : i32, i32
  }
  func.func @transform_8(%arg0: i32) -> (i32, i32) {
    %c0_i32 = arith.constant 0 : i32
    %c0_i32_0 = arith.constant 0 : i32
    %c0_i32_1 = arith.constant 0 : i32
    return %c0_i32, %c0_i32_0 : i32, i32
  }
  func.func @transform_9(%arg0: i32) -> (i32, i32) {
    %c0_i32 = arith.constant 0 : i32
    %c0_i32_0 = arith.constant 0 : i32
    %c0_i32_1 = arith.constant 0 : i32
    return %c0_i32, %c0_i32_0 : i32, i32
  }
  func.func @transform_10(%arg0: i32) -> (i32, i32) {
    %c0_i32 = arith.constant 0 : i32
    %c0_i32_0 = arith.constant 0 : i32
    %c0_i32_1 = arith.constant 0 : i32
    return %c0_i32, %c0_i32_0 : i32, i32
  }
  func.func @transform_11(%arg0: i32) -> (i32, i32) {
    %c0_i32 = arith.constant 0 : i32
    %c0_i32_0 = arith.constant 0 : i32
    %c0_i32_1 = arith.constant 0 : i32
    return %c0_i32, %c0_i32_0 : i32, i32
  }
  func.func @transform_12(%arg0: i32) -> (i32, i32) {
    %c0_i32 = arith.constant 0 : i32
    %c0_i32_0 = arith.constant 0 : i32
    %c0_i32_1 = arith.constant 0 : i32
    return %c0_i32, %c0_i32_0 : i32, i32
  }
  func.func @transform_13(%arg0: i32) -> (i32, i32) {
    %c0_i32 = arith.constant 0 : i32
    %c0_i32_0 = arith.constant 0 : i32
    %c0_i32_1 = arith.constant 0 : i32
    return %c0_i32, %c0_i32_0 : i32, i32
  }
  func.func @transform_14(%arg0: i32) -> (i32, i32) {
    %c0_i32 = arith.constant 0 : i32
    %c0_i32_0 = arith.constant 0 : i32
    return %arg0, %c0_i32 : i32, i32
  }
}

</mosaic_0001>

<bundles_post_ra>
// kernel: tpu_custom_call.1
= control target key start
LH: loop header
LB: loop body
LE: loop exit
PB: predicated region body
PF: predicated region fallthrough
CT: control target
= control target key end

     0   :  { %s2138_s0 = inlined_call_operand.vmem [shape: f32[32,32], index: 0, kind: input, shape index: {}]   ;;  %s2139_s1 = inlined_call_operand.hbm [shape: f32[2,16,16], index: 1, kind: input, shape index: {}]   ;;  %s2140_s2 = inlined_call_operand.hbm [shape: f32[1,32], index: 2, kind: input, shape index: {}]   ;;  %s2141_s3 = inlined_call_operand.hbm [shape: f32[1,32], index: 3, kind: input, shape index: {}]   ;;  %s2142_s4 = inlined_call_operand.vmem [shape: f32[32,16], index: 4, kind: input, shape index: {}]   ;;  %s2143_s5 = inlined_call_operand.hbm [shape: f32[1,16], index: 5, kind: input, shape index: {}]   ;;  %s2144_s6 = inlined_call_operand.hbm [shape: f32[1,16], index: 6, kind: input, shape index: {}]   ;;  %s2145_s7 = inlined_call_operand.hbm [shape: f32[1,16], index: 7, kind: input, shape index: {}]   ;;  %s2146_s8 = inlined_call_operand.vmem [shape: f32[16,16], index: 8, kind: input, shape index: {}]   ;;  %s2147_s9 = inlined_call_operand.hbm [shape: f32[1,16], index: 9, kind: input, shape index: {}]   ;;  %s2148_s10 = inlined_call_operand.vmem [shape: f32[1,16], index: 10, kind: input, shape index: {}]   ;;  %s2149_s11 = inlined_call_operand.vmem [shape: f32[1,16], index: 11, kind: input, shape index: {}]   ;;  %s2150_s12 = inlined_call_operand.vmem [shape: f32[16,32], index: 12, kind: input, shape index: {}]   ;;  %s2151_s13 = inlined_call_operand.vmem [shape: f32[1,32], index: 13, kind: input, shape index: {}]   ;;  %s2152_s14 = inlined_call_operand.hbm [shape: f32[32,32], index: 14, kind: output, shape index: {}]  }
   0x1   :  { %2158 = sst [smem:[#allocation21_spill]] %s2140_s2 }
   0x2   :  { %2159 = sst [smem:[#allocation22_spill]] %s2141_s3 }
   0x3   :  { %2160 = sst [smem:[#allocation23_spill]] %s2143_s5 }
   0x4   :  { %2161 = sst [smem:[#allocation24_spill]] %s2144_s6 }
   0x5   :  { %2162 = sst [smem:[#allocation25_spill]] %s2145_s7 }
   0x6   :  { %2163 = sst [smem:[#allocation26_spill]] %s2147_s9 }
   0x7   :  { %2164 = sst [smem:[#allocation27_spill]] %s2152_s14 }
   0x8   :  { %19 = vsyncpa [#allocation3], 0 }
   0x9   :  { %21 = vsyncpa [#allocation3 + $0x1], 0 }
   0xa   :  { %22 = vsyncpa [#allocation6], 0 }
   0xb   :  { %23 = vsyncpa [#allocation9], 0 }
   0xc   :  { %24 = vsyncpa [#allocation12], 0 }
   0xd   :  { %25 = vsyncpa [#allocation4], 0 }
   0xe   :  { %27 = vsyncpa [#allocation4 + $0x1], 0  ;;  %s1812_s29 = smov 0   ;;  %s1814_s30 = smov 0  }
   0xf   :  { %s1816_s15 = smov 0   ;;  %s1818_s16 = smov 0  }
  0x10 LB: > { %s1725_s17 = smov [#allocation5]   ;;  %s1833_s19 = sadd.s32 4294967295, %s1723_s16   ;;  %s1723_s16 = sphi %s1818_s16, %s2197_s16   ;;  %s1719_s15 = sphi %s1816_s15, %s2196_s15   ;;  %s1715_s30 = sphi %s1814_s30, %s2195_s30   ;;  %s1711_s29 = sphi %s1812_s29, %s2194_s29  }
  0x11   : > { %s381_s18 = sshll.u32 %s1725_s17, 4  ;;  %p1244_p0 = scmp.ge.s32.totalorder %s1723_s16, 1  ;;  %s382_s18 = int_to_ptr.vmem [resolvable:$true] %s381_s18 }
  0x12   : > { %p2154_p1 = scmp.eq.s32.totalorder %s1833_s19, 0  ;;  %p368_p2 = scmp.lt.s32.totalorder %s1723_s16, 3 }
  0x13   : > { %s1726_s21 = smov [#allocation8]   ;;  %s1727_s23 = smov [#allocation11]  }
  0x14   : > { %p1838_p3 = pnand %p1244_p0, %p368_p2  ;;  %s406_s22 = sshll.u32 %s1726_s21, 4  ;;  %s1845_s22 = int_to_ptr.vmem [resolvable:$true] %s406_s22 }
  0x15   : > { %s428_s24 = sshll.u32 %s1727_s23, 4  ;;  %s1728_s26 = smov [#allocation7]   ;;  %s1853_s24 = int_to_ptr.vmem [resolvable:$true] %s428_s24 }
  0x16   : > { %s2165_s20 = scalar_select %p1838_p3, 1, 0 }
  0x17   : > { %p1368_p5 = pneg %p1838_p3  ;;  %s1855_s27 = sshll.u32 %s1728_s26, 4  ;;  %s393_s27 = int_to_ptr.vmem [resolvable:$true] %s1855_s27 }
  0x18   : > { %s1474_s17 = scalar_lea.vmem %s382_s18, 16  ;;  %s1481_s21 = scalar_lea.vmem %s382_s18, 32 }
  0x19   : > { %p1849_p6 = pnand %p1368_p5, %p2154_p1  ;;  %p1475_p8 = scmp.ne.s32.totalorder %s382_s18, %s1474_s17 }
  0x1a   : > { %p1482_p11 = scmp.lt.s32.totalorder %s382_s18, %s382_s18  ;;  %p1483_p12 = scmp.lt.s32.totalorder %s1481_s21, %s1474_s17 }
  0x1b   : > { %p1859_p7 = pneg %p1849_p6 }
  0x1c   : > { %p1484_p13 = por %p1483_p12, %p1482_p11 }
  0x1d   : > { %p1477_p9 = pnand %p1475_p8, %p1859_p7 }
  0x1f   : > { %p1478_p10 = pneg %p1477_p9 }
  0x21   : > { %p1485_p0 = pnand %p1484_p13, %p1478_p10 }
  0x23   : > { %1488 = shalt.err (!%p1485_p0)
}
  0x24   : > { %s2168_s2 = sld [smem:[#allocation21_spill]]  ;;  %s1500_s14 = scalar_lea.vmem %s1845_s22, 16 }
  0x25   : > { %p1501_p2 = scmp.ne.s32.totalorder %s1845_s22, %s1500_s14  ;;  %s1507_s17 = scalar_lea.vmem %s1845_s22, 32 }
  0x26   : > { %p1508_p9 = scmp.lt.s32.totalorder %s1845_s22, %s1845_s22  ;;  %p1509_p10 = scmp.lt.s32.totalorder %s1507_s17, %s1500_s14 }
  0x27   : > { %p1503_p5 = pnand %p1501_p2, %p1859_p7 }
  0x28   : > { %p1510_p11 = por %p1509_p10, %p1508_p9 }
  0x29   : > { %p1504_p8 = pneg %p1503_p5 }
  0x2a   : > { %1371 = dma.hbm_to_vmem [thread:$0]  (!%p1849_p6), %s2168_s2, 16, %s382_s18, [#allocation6]  }
  0x2b   : > { %p1511_p12 = pnand %p1510_p11, %p1504_p8 }
  0x2d   : > { %1514 = shalt.err (!%p1511_p12)
}
  0x2e   : > { %s2169_s5 = sld [smem:[#allocation23_spill]]  ;;  %s1526_s18 = scalar_lea.vmem %s1853_s24, 16 }
  0x2f   : > { %p1527_p13 = scmp.ne.s32.totalorder %s1853_s24, %s1526_s18  ;;  %s1533_s14 = scalar_lea.vmem %s1853_s24, 32 }
  0x30   : > { %p1534_p5 = scmp.lt.s32.totalorder %s1853_s24, %s1853_s24  ;;  %p1535_p8 = scmp.lt.s32.totalorder %s1533_s14, %s1526_s18 }
  0x31   : > { %p1529_p0 = pnand %p1527_p13, %p1859_p7 }
  0x32   : > { %p1536_p9 = por %p1535_p8, %p1534_p5 }
  0x33   : > { %p1530_p2 = pneg %p1529_p0 }
  0x34   : > { %1377 = dma.hbm_to_vmem [thread:$0]  (!%p1849_p6), %s2169_s5, 16, %s1845_s22, [#allocation9]  }
  0x35   : > { %p1537_p10 = pnand %p1536_p9, %p1530_p2 }
  0x37   : > { %1540 = shalt.err (!%p1537_p10)
}
  0x38   : > { %s2170_s7 = sld [smem:[#allocation25_spill]]  ;;  %s1729_s22 = smov [#allocation10]  }
  0x39   : > { %s417_s21 = sshll.u32 %s1729_s22, 4  ;;  %s1552_s23 = scalar_lea.vmem %s393_s27, 16  ;;  %s418_s21 = int_to_ptr.vmem [resolvable:$true] %s417_s21 }
  0x3a   : > { %p1553_p11 = scmp.ne.s32.totalorder %s393_s27, %s1552_s23  ;;  %s1559_s18 = scalar_lea.vmem %s393_s27, 32 }
  0x3b   : > { %p1560_p0 = scmp.lt.s32.totalorder %s393_s27, %s393_s27  ;;  %p1561_p2 = scmp.lt.s32.totalorder %s1559_s18, %s1552_s23 }
  0x3c   : > { %p1555_p12 = pnand %p1553_p11, %p1859_p7 }
  0x3d   : > { %p1562_p5 = por %p1561_p2, %p1560_p0 }
  0x3e   : > { %1383 = dma.hbm_to_vmem [thread:$0]  (!%p1849_p6), %s2170_s7, 16, %s1853_s24, [#allocation12]  }
  0x3f   : > { %p1556_p13 = pneg %p1555_p12 }
  0x41   : > { %p1563_p8 = pnand %p1562_p5, %p1556_p13 }
  0x43   : > { %1566 = shalt.err (!%p1563_p8)
}
  0x44   : > { %s2171_s3 = sld [smem:[#allocation22_spill]]  ;;  %s1578_s24 = scalar_lea.vmem %s418_s21, 16 }
  0x45   : > { %p1579_p9 = scmp.ne.s32.totalorder %s418_s21, %s1578_s24  ;;  %s1585_s17 = scalar_lea.vmem %s418_s21, 32 }
  0x46   : > { %p1586_p12 = scmp.lt.s32.totalorder %s418_s21, %s418_s21  ;;  %p1587_p4 = scmp.lt.s32.totalorder %s1585_s17, %s1578_s24 }
  0x47   : > { %p1581_p10 = pnand %p1579_p9, %p1859_p7 }
  0x48   : > { %p1588_p1 = por %p1587_p4, %p1586_p12 }
  0x49   : > { %p1582_p11 = pneg %p1581_p10 }
  0x4a   : > { %1374 = dma.hbm_to_vmem [thread:$0]  (!%p1849_p6), %s2171_s3, 16, %s393_s27, [#allocation6]  }
  0x4b   : > { %p1589_p0 = pnand %p1588_p1, %p1582_p11 }
  0x4d   : > { %1592 = shalt.err (!%p1589_p0)
}
  0x4e   : > { %s2172_s6 = sld [smem:[#allocation24_spill]]  ;;  %s1730_s27 = smov [#allocation13]  }
  0x4f   : > { %s442_s18 = sshll.u32 %s1730_s27, 4  ;;  %s443_s18 = int_to_ptr.vmem [resolvable:$true] %s442_s18 }
  0x50   : > { %s1604_s14 = scalar_lea.vmem %s443_s18, 16  ;;  %s1611_s26 = scalar_lea.vmem %s443_s18, 32 }
  0x51   : > { %p1605_p13 = scmp.ne.s32.totalorder %s443_s18, %s1604_s14  ;;  %p1612_p8 = scmp.lt.s32.totalorder %s443_s18, %s443_s18 }
  0x52   : > { %p1613_p4 = scmp.lt.s32.totalorder %s1611_s26, %s1604_s14 }
  0x53   : > { %p1607_p2 = pnand %p1605_p13, %p1859_p7 }
  0x54   : > { %1380 = dma.hbm_to_vmem [thread:$0]  (!%p1849_p6), %s2172_s6, 16, %s418_s21, [#allocation9]  }
  0x55   : > { %p1608_p5 = pneg %p1607_p2  ;;  %p1614_p1 = por %p1613_p4, %p1612_p8 }
  0x57   : > { %p1615_p9 = pnand %p1614_p1, %p1608_p5 }
  0x59   : > { %1618 = shalt.err (!%p1615_p9)
}
  0x5a   : > { %s2173_s9 = sld [smem:[#allocation26_spill]]  ;;  %s1243_s28 = sadd.s32 4294967294, %s1723_s16  }
  0x5b   : > { %s1920_s25 = sadd.s32 1, %s1723_s16   ;;  %s66_s22 = sadd.s32 1, %s1719_s15 }
  0x5c   : > { %s63_s21 = ssub.s32 %s1723_s16, %s1920_s25  ;;  %p73_p10 = scmp.ne.s32.totalorder %s1719_s15, %s1715_s30 }
  0x5d   : > { %p64_p7 = scmp.eq.s32.totalorder %s63_s21, 0  ;;  %p74_p11 = scmp.eq.s32.totalorder %s1723_s16, 0 }
  0x5e   : > { %p79_p12 = scmp.ne.s32.totalorder %s1715_s30, %s1711_s29  ;;  %p2176_p13 = scmp.eq.s32.totalorder %s1833_s19, 0 }
  0x5f   : > { %s1931_s23 = scalar_select %p64_p7, %s1719_s15, %s66_s22  }
  0x60   : > { %1386 = dma.hbm_to_vmem [thread:$0]  (!%p1849_p6), %s2173_s9, 16, %s443_s18, [#allocation12]  }
  0x61   : > { %2174 = sst [smem:[#allocation20_spill]] %s1931_s23  ;;  %p1933_p0 = por %p74_p11, %p73_p10 }
  0x62   : > { %p1939_p6 = por %p2176_p13, %p79_p12  ;;  %p355_p2 = scmp.eq.s32.totalorder %s1833_s19, 1 }
  0x63   : > { %p361_p5 = scmp.eq.s32.totalorder %s1243_s28, 1  ;;  %p1401_p8 = scmp.lt.s32.totalorder %s1723_s16, 2 }
  0x64   : > { %s2177_s18 = scalar_select %p1939_p6, 1, 0 }
  0x65   : > { %s474_s14 = sand.u32 1, %s1719_s15   ;;  %p1946_p4 = por %p355_p2, %p73_p10 }
  0x66   : > { %p1950_p1 = por %p361_p5, %p79_p12  ;;  %s1252_s17 = sshll.u32 %s474_s14, 4 }
  0x67   : > { %s2178_s26 = scalar_select %p1946_p4, 1, 0 }
  0x68   : > { %s2179_s24 = scalar_select %p1950_p1, 1, 0 }
  0x69   : > { %s1288_s21 = sshll.u32 %s1723_s16, 8  ;;  %s478_s28 = scalar_lea.vmem [#allocation2], %s1252_s17 }
  0x6a   : > { %s1958_s3 = scalar_lea.hbm %s2139_s1, %s1288_s21  ;;  %s485_s5 = sshll.u32 %s478_s28, 4  ;;  %s1960_s5 = int_to_ptr.vmem [resolvable:$true] %s485_s5 }
  0x6b   : > { %p1964_p9 = pnand %p1401_p8, %p1933_p0  ;;  %s1968_s7 = scalar_lea.sflag [#allocation3], %s474_s14 }
  0x6c   : > { %s1619_s9 = scalar_lea.hbm %s1958_s3, 256  ;;  %s1624_s17 = scalar_lea.hbm %s2139_s1, 512 }
  0x6d   : > { %p1620_p7 = scmp.ne.s32.totalorder %s1958_s3, %s1619_s9  ;;  %p1621_p10 = pneg %p1964_p9 }
  0x6e   : > { %p1625_p0 = scmp.lt.s32.totalorder %s1958_s3, %s2139_s1  ;;  %p1626_p13 = scmp.lt.s32.totalorder %s1624_s17, %s1619_s9 }
  0x6f   : > { %p1622_p11 = pnand %p1621_p10, %p1620_p7 }
  0x70   : > { %p1627_p2 = por %p1626_p13, %p1625_p0 }
  0x71   : > { %p1623_p12 = pneg %p1622_p11 }
  0x73   : > { %p1628_p5 = pnand %p1627_p2, %p1623_p12 }
  0x75   : > { %1631 = shalt.err (!%p1628_p5)
}
  0x76   : > { %s1632_s27 = scalar_lea.vmem %s1960_s5, 256  ;;  %s1731_s14 = smov [#allocation2]  }
  0x77   : > { %p1633_p8 = scmp.ne.s32.totalorder %s1960_s5, %s1632_s27  ;;  %s1637_s23 = sshll.u32 %s1731_s14, 4  ;;  %s1638_s23 = int_to_ptr.vmem [resolvable:$false] %s1637_s23 }
  0x78   : > { %s1639_s2 = scalar_lea.vmem %s1638_s23, 512  ;;  %p1640_p11 = scmp.lt.s32.totalorder %s1960_s5, %s1638_s23 }
  0x79   : > { %p1635_p1 = pnand %p1633_p8, %p1621_p10  ;;  %p1641_p4 = scmp.lt.s32.totalorder %s1639_s2, %s1632_s27 }
  0x7b   : > { %p1636_p7 = pneg %p1635_p1  ;;  %p1642_p6 = por %p1641_p4, %p1640_p11 }
  0x7d   : > { %p1643_p3 = pnand %p1642_p6, %p1636_p7 }
  0x7f   : > { %1646 = shalt.err (!%p1643_p3)
}
  0x80   : > { %s1732_s9 = smov 128   ;;  %s1733_s21 = smov 8  }
  0x81   : > { %1390 = dma.hbm_to_vmem [thread:$0]  (!%p1964_p9), %s1958_s3, 256, %s1960_s5, %s1968_s7, %s1732_s9, %s1732_s9, %s1733_s21  }
  0x82   : > { %p2181_p10 = scmp.ne.s32.totalorder %s2165_s20, 0 }
  0x83   : > { %s1992_s17 = sand.u32 (!%p2181_p10), 1, %s1715_s30   ;;  %p2182_p3 = scmp.ne.s32.totalorder (!%p2181_p10), %s2177_s18, 0 }
  0x84   : > { %497 = sbr.rel (%p2181_p10) target bundleno = 1895 (0x767), region = 76  ;;  %s1256_s23 = sshll.u32 (!%p2181_p10), %s1992_s17, 4 }
  0x85   : > { %s500_s22 = scalar_lea.sflag (!%p2181_p10), [#allocation3], %s1992_s17  ;;  %s1998_s28 = scalar_lea.vmem (!%p2181_p10), [#allocation2], %s1256_s23 }
  0x89   : > { %1690 = dma.done.wait (%p2182_p3), %s500_s22, 256  }
  0x8a   : > { %1692 = vsyncadd (%p2182_p3), %s500_s22, 4294967040  ;;  %p2183_p6 = scmp.eq.s32.totalorder %s1833_s19, 0 }
  0x8c   : > { %1694 = dma.done.wait (%p2183_p6), [#allocation6], 32   ;;  %p2184_p4 = pmov %p2183_p6 }
  0x8e   : > { %1696 = vsyncadd (%p2184_p4), [#allocation6], 4294967264  ;;  %p2185_p1 = pmov %p2184_p4 }
  0x90   : > { %1698 = dma.done.wait (%p2185_p1), [#allocation9], 32   ;;  %p2186_p9 = pmov %p2185_p1 }
  0x91   : > { %p2187_p12 = pmov %p2185_p1 }
  0x92   : > { %1700 = vsyncadd (%p2186_p9), [#allocation9], 4294967264 }
  0x93   : > { %1702 = dma.done.wait (%p2187_p12), [#allocation12], 32   ;;  %p2188_p0 = pmov %p2185_p1 }
  0x94   : > { %s1264_s3 = sshll.u32 %s1833_s19, 1  ;;  %vm590_vm0 = vcmask 261120   ;;  %v639_v14 = vld [vmem:[%s2142_s4 + $0x18] sm:$0xff]  ;;  %v638_v15 = vld [vmem:[%s2142_s4 + $0x10] sm:$0xff]  ;;  %v637_v16 = vld [vmem:[%s2142_s4 + $0x8] sm:$0xff]  ;;  %vm730_vm1 = vcmask 130048  }
  0x95   : > { %1704 = vsyncadd (%p2188_p0), [#allocation12], 4294967264  ;;  %p578_p13 = scmp.lt.s32.totalorder %s1264_s3, 3  ;;  %1308 = vmatprep.subr.mxu0 %v639_v14  ;;  %v636_v17 = vld [vmem:[%s2142_s4] sm:$0xff]  ;;  %v777_v53 = vld [vmem:[%s2146_s8 + $0x8] sm:$0xff]  ;;  %s1289_s6 = sshll.u32 %s1833_s19, 8 }
  0x96   : > { %1309 = vmatpush3.msra.mxu0 %v639_v14  ;;  %v1266_v24 = vld [vmem:[#allocation5] ss:$0 sm:$0xff]  ;;  %v1267_v27 = vld [vmem:[#allocation7] ss:$0 sm:$0xff]  ;;  %v1268_v36 = vld [vmem:[#allocation8] ss:$0 sm:$0xff]  ;;  %1319 = vmatprep.subr.mxu1 %v777_v53 }
  0x97   : > { %s2199_s3 = smov (!%p578_p13, %s1264_s3), 3  ;;  %1310 = vmatprep.subr.mxu0 %v638_v15  ;;  %v776_v54 = vld [vmem:[%s2146_s8] sm:$0xff]  ;;  %1320 = vmatpush3.msra.mxu1 %v777_v53  ;;  %v587_v14 = vld [vmem:[%s1998_s28 + $0x8] sm:$0xff]  ;;  %s576_s7 = scalar_lea.vmem [#allocation14], %s1256_s23 }
  0x98   : > { %s1265_s5 = sshll.u32 %s2199_s3, 3  ;;  %1311 = vmatpush3.msra.mxu0 %v638_v15  ;;  %1321 = vmatprep.subr.mxu1 %v776_v54  ;;  %v1271_v61 = vld [vmem:[#allocation10] ss:$0 sm:$0xff]  ;;  %v1275_v15 = vld [vmem:[#allocation13] ss:$0 sm:$0xff]  ;;  %s2189_s27 = sld [smem:[#allocation27_spill]] }
  0x99   : > { %s581_s20 = scalar_lea.vmem %s2138_s0, %s1265_s5  ;;  %1312 = vmatprep.subr.mxu0 %v637_v16  ;;  %1322 = vmatpush3.msra.mxu1 %v776_v54  ;;  %s1088_s19 = scalar_lea.sflag [#allocation4], %s1992_s17 }
  0x9a   : > { %v2020_v0 = vld [vmem:[%s581_s20] sm:$0xff]  ;;  %v2022_v1 = vld [vmem:[%s581_s20 + $0x8] sm:$0xff]  ;;  %1313 = vmatpush3.msra.mxu0 %v637_v16  ;;  %s1101_s20 = sshll.u32 %s576_s7, 4  ;;  %p2190_p5 = scmp.ne.s32.totalorder %s2178_s26, 0  ;;  %s2092_s20 = int_to_ptr.vmem [resolvable:$true] %s1101_s20 }
  0x9b   : > { %v591_v2 = vsel %vm590_vm0, %v2020_v0, 0.0  ;;  %v594_v3 = vsel %vm590_vm0, %v2022_v1, 0.0  ;;  %1314 = vmatprep.subr.mxu0 %v636_v17  ;;  %s1647_s23 = scalar_lea.vmem %s2092_s20, 256  ;;  %s1734_s2 = smov [#allocation14]  }
  0x9c   : > { %592 = vadd.xlane.f32.xlu0 %v591_v2  ;;  %1315 = vmatpush3.msra.mxu0 %v636_v17  ;;  %p1648_p2 = scmp.ne.s32.totalorder %s2092_s20, %s1647_s23  ;;  %s1651_s9 = sshll.u32 %s1734_s2, 4  ;;  %s1652_s9 = int_to_ptr.vmem [resolvable:$false] %s1651_s9 }
  0x9d   : > { %s1653_s21 = scalar_lea.vmem %s1652_s9, 512  ;;  %p1654_p11 = scmp.lt.s32.totalorder %s2092_s20, %s1652_s9 }
  0x9e   : > { %s2090_s14 = scalar_lea.hbm %s2189_s27, %s1289_s6  ;;  %p1649_p8 = pnand %p1648_p2, %p2190_p5 }
  0x9f   : > { %p1655_p10 = scmp.lt.s32.totalorder %s1653_s21, %s1647_s23 }
  0xa0   : > { %595 = vadd.xlane.f32.xlu0 %v594_v3  ;;  %v1272_v3 = vld [vmem:[#allocation11] ss:$0 sm:$0xff]  ;;  %p1650_p7 = pneg %p1649_p8 }
  0xa1   : > { %p1656_p3 = por %p1655_p10, %p1654_p11 }
  0xa3   : > { %p1657_p6 = pnand %p1656_p3, %p1650_p7 }
 0x125   : > { %v593_v4 = vpop.xlane.xlu0 %592 }
 0x126   : > { %v598_v5 = vmul.f32 0.03125, %v593_v4 }
 0x128   : > { %v600_v6 = vsub.f32 %v2020_v0, %v598_v5 }
 0x129   : > { %v596_v7 = vpop.xlane.xlu0 %595 }
 0x12a   : > { %v599_v8 = vmul.f32 0.03125, %v596_v7  ;;  %v602_v9 = vmul.f32 %v600_v6, %v600_v6 }
 0x12c   : > { %v601_v10 = vsub.f32 %v2022_v1, %v599_v8  ;;  %v604_v11 = vsel %vm590_vm0, %v602_v9, 0.0 }
 0x12d   : > { %605 = vadd.xlane.f32.xlu1 %v604_v11  ;;  %v586_v11 = vld [vmem:[%s1998_s28] sm:$0xff] }
 0x12e   : > { %v603_v12 = vmul.f32 %v601_v10, %v601_v10 }
 0x130   : > { %v607_v13 = vsel %vm590_vm0, %v603_v12, 0.0 }
 0x131   : > { %608 = vadd.xlane.f32.xlu1 %v607_v13 }
 0x1b6   : > { %v606_v18 = vpop.xlane.xlu1 %605 }
 0x1b7   : > { %v610_v19 = vmul.f32 0.03125, %v606_v18 }
 0x1b9   : > { %v612_v20 = vadd.f32 1e-12, %v610_v19 }
 0x1ba   : > { %v609_v21 = vpop.xlane.xlu1 %608 }
 0x1bb   : > { %1451 = vrsqrt.f32 %v612_v20  ;;  %v611_v22 = vmul.f32 0.03125, %v609_v21 }
 0x1bd   : > { %v613_v23 = vadd.f32 1e-12, %v611_v22 }
 0x1bf   : > { %1453 = vrsqrt.f32 %v613_v23 }
 0x1c8   : > { %v1452_v25 = vpop.eup %1451 }
 0x1c9   : > { %v622_v26 = vmul.f32 %v1452_v25, %v1266_v24 }
 0x1cb   : > { %v624_v28 = vmul.f32 %v622_v26, %v600_v6 }
 0x1cc   : > { %v1454_v29 = vpop.eup %1453 }
 0x1cd   : > { %v623_v30 = vmul.f32 %v1454_v29, %v1266_v24  ;;  %v632_v31 = vadd.f32 %v1267_v27, %v624_v28 }
 0x1cf   : > { %v625_v32 = vmul.f32 %v623_v30, %v601_v10  ;;  %v634_v33 = vmax.f32 %v632_v31, 0.0 }
 0x1d1   : > { %v633_v34 = vadd.f32 %v1267_v27, %v625_v32  ;;  %1316 = vmatprep.mubr.msk.f32.mxu0 %vm590_vm0, %v634_v33  ;;  %v994_v32 = vld [vmem:[%s2150_s12 + $0x8] sm:$0xff]  ;;  %v993_v33 = vld [vmem:[%s2150_s12] sm:$0xff] }
 0x1d2   : > { %1333 = vmatprep.subr.mxu0 %v994_v32 }
 0x1d3   : > { %v635_v35 = vmax.f32 %v633_v34, 0.0 }
 0x1d5   : > { %1317 = vmatmul.mubr.msk.f32.vlgmr.msra.gmra.mxu0 %vm590_vm0, %v635_v35 }
 0x1d6   : > { %1334 = vmatpush3.msra.mxu0 %v994_v32 }
 0x1d7   : > { %1335 = vmatprep.subr.mxu0 %v993_v33 }
 0x1d8   : > { %1336 = vmatpush3.msra.mxu0 %v993_v33 }
 0x295   : > { %v1318_v37 = vpop.f32.mrf.mxu0 }
 0x296   : > { %v725_v38 = vadd.f32 %v1318_v37, %v1268_v36 }
 0x297   : > { %v719_v39 = vpop.f32.mrf.mxu0 }
 0x298   : > { %v720_v40 = vadd.f32 %v1268_v36, %v719_v39  ;;  %v734_v41 = vsel %vm730_vm1, %v725_v38, 0.0 }
 0x299   : > { %735 = vadd.xlane.f32.xlu1 %v734_v41 }
 0x29a   : > { %v731_v42 = vsel %vm730_vm1, %v720_v40, 0.0 }
 0x29b   : > { %732 = vadd.xlane.f32.xlu0 %v731_v42 }
 0x322   : > { %v736_v43 = vpop.xlane.xlu1 %735 }
 0x323   : > { %v739_v44 = vmul.f32 0.0625, %v736_v43 }
 0x324   : > { %v733_v45 = vpop.xlane.xlu0 %732 }
 0x325   : > { %v741_v46 = vsub.f32 %v725_v38, %v739_v44  ;;  %v738_v47 = vmul.f32 0.0625, %v733_v45  ;;  %v1279_v44 = vld [vmem:[%s2149_s11] ss:$0 sm:$0xff] }
 0x327   : > { %v740_v48 = vsub.f32 %v720_v40, %v738_v47  ;;  %v743_v49 = vmul.f32 %v741_v46, %v741_v46  ;;  %v1278_v40 = vld [vmem:[%s2148_s10] ss:$0 sm:$0xff] }
 0x329   : > { %v747_v50 = vsel %vm730_vm1, %v743_v49, 0.0  ;;  %v742_v51 = vmul.f32 %v740_v48, %v740_v48 }
 0x32a   : > { %748 = vadd.xlane.f32.xlu1 %v747_v50 }
 0x32b   : > { %v744_v52 = vsel %vm730_vm1, %v742_v51, 0.0 }
 0x32c   : > { %745 = vadd.xlane.f32.xlu0 %v744_v52  ;;  %v1280_v52 = vld [vmem:[%s2151_s13] ss:$0 sm:$0xff] }
 0x3b3   : > { %v749_v55 = vpop.xlane.xlu1 %748 }
 0x3b4   : > { %v751_v56 = vmul.f32 0.0625, %v749_v55 }
 0x3b5   : > { %v746_v57 = vpop.xlane.xlu0 %745 }
 0x3b6   : > { %v753_v58 = vadd.f32 1e-12, %v751_v56  ;;  %v750_v59 = vmul.f32 0.0625, %v746_v57 }
 0x3b8   : > { %1455 = vrsqrt.f32 %v753_v58  ;;  %v752_v60 = vadd.f32 1e-12, %v750_v59 }
 0x3ba   : > { %1457 = vrsqrt.f32 %v752_v60 }
 0x3c5   : > { %v1456_v62 = vpop.eup %1455 }
 0x3c6   : > { %v763_v63 = vmul.f32 %v1456_v62, %v1271_v61 }
 0x3c7   : > { %v1458_v2 = vpop.eup %1457 }
 0x3c8   : > { %v762_v4 = vmul.f32 %v1458_v2, %v1271_v61  ;;  %v765_v5 = vmul.f32 %v763_v63, %v741_v46 }
 0x3ca   : > { %v764_v6 = vmul.f32 %v762_v4, %v740_v48  ;;  %v773_v7 = vadd.f32 %v1272_v3, %v765_v5 }
 0x3cc   : > { %v772_v8 = vadd.f32 %v1272_v3, %v764_v6  ;;  %v775_v10 = vmax.f32 %v773_v7, 0.0 }
 0x3ce   : > { %v774_v9 = vmax.f32 %v772_v8, 0.0 }
 0x3d0   : > { %1323 = vmatprep.mubr.msk.f32.mxu1 %vm730_vm1, %v774_v9 }
 0x3d1   : > { %1324 = vmatmul.mubr.msk.f32.vlgmr.msra.gmra.mxu1 %vm730_vm1, %v775_v10 }
 0x3d2   : > { %1330 = vmatprep.mubr.msk.f32.mxu1 %vm730_vm1, %v586_v11 }
 0x491   : > { %v1325_v12 = vpop.f32.mrf.mxu1 }
 0x492   : > { %1326 = vmatprep.subr.mxu1 %v1325_v12 }
 0x493   : > { %v850_v13 = vpop.f32.mrf.mxu1  ;;  %1327 = vmatpush3.msra.mxu1 %v1325_v12 }
 0x494   : > { %1328 = vmatprep.subr.mxu1 %v850_v13 }
 0x495   : > { %1329 = vmatpush3.msra.mxu1 %v850_v13 }
 0x496   : > { %1331 = vmatmul.mubr.msk.f32.vlgmr.msra.gmra.mxu1 %vm730_vm1, %v587_v14 }
 0x556   : > { %v1332_v16 = vpop.f32.mrf.mxu1 }
 0x557   : > { %v944_v17 = vadd.f32 %v1332_v16, %v1275_v15 }
 0x558   : > { %v938_v18 = vpop.f32.mrf.mxu1 }
 0x559   : > { %v939_v19 = vadd.f32 %v1275_v15, %v938_v18  ;;  %v952_v20 = vsel %vm730_vm1, %v944_v17, 0.0 }
 0x55a   : > { %953 = vadd.xlane.f32.xlu1 %v952_v20 }
 0x55b   : > { %v949_v21 = vsel %vm730_vm1, %v939_v19, 0.0 }
 0x55c   : > { %950 = vadd.xlane.f32.xlu0 %v949_v21 }
 0x5e3   : > { %v954_v22 = vpop.xlane.xlu1 %953 }
 0x5e4   : > { %v956_v23 = vmul.f32 0.0625, %v954_v22 }
 0x5e5   : > { %v951_v24 = vpop.xlane.xlu0 %950 }
 0x5e6   : > { %v958_v25 = vsub.f32 %v944_v17, %v956_v23  ;;  %v955_v26 = vmul.f32 0.0625, %v951_v24 }
 0x5e8   : > { %v957_v27 = vsub.f32 %v939_v19, %v955_v26  ;;  %v960_v28 = vmul.f32 %v958_v25, %v958_v25 }
 0x5ea   : > { %v964_v29 = vsel %vm730_vm1, %v960_v28, 0.0  ;;  %v959_v30 = vmul.f32 %v957_v27, %v957_v27 }
 0x5eb   : > { %965 = vadd.xlane.f32.xlu1 %v964_v29 }
 0x5ec   : > { %v961_v31 = vsel %vm730_vm1, %v959_v30, 0.0 }
 0x5ed   : > { %962 = vadd.xlane.f32.xlu0 %v961_v31 }
 0x674   : > { %v966_v34 = vpop.xlane.xlu1 %965 }
 0x675   : > { %v968_v35 = vmul.f32 0.0625, %v966_v34 }
 0x676   : > { %v963_v36 = vpop.xlane.xlu0 %962 }
 0x677   : > { %v970_v37 = vadd.f32 1e-12, %v968_v35  ;;  %v967_v38 = vmul.f32 0.0625, %v963_v36 }
 0x679   : > { %1459 = vrsqrt.f32 %v970_v37  ;;  %v969_v39 = vadd.f32 1e-12, %v967_v38 }
 0x67b   : > { %1461 = vrsqrt.f32 %v969_v39 }
 0x686   : > { %v1460_v41 = vpop.eup %1459 }
 0x687   : > { %v980_v42 = vmul.f32 %v1460_v41, %v1278_v40 }
 0x688   : > { %v1462_v43 = vpop.eup %1461 }
 0x689   : > { %v979_v45 = vmul.f32 %v1462_v43, %v1278_v40  ;;  %v982_v46 = vmul.f32 %v980_v42, %v958_v25 }
 0x68b   : > { %v981_v47 = vmul.f32 %v979_v45, %v957_v27  ;;  %v990_v48 = vadd.f32 %v1279_v44, %v982_v46 }
 0x68d   : > { %v989_v49 = vadd.f32 %v1279_v44, %v981_v47  ;;  %v992_v51 = vmax.f32 %v990_v48, 0.0 }
 0x68f   : > { %v991_v50 = vmax.f32 %v989_v49, 0.0 }
 0x691   : > { %1337 = vmatprep.mubr.msk.f32.mxu0 %vm730_vm1, %v991_v50 }
 0x692   : > { %1338 = vmatmul.mubr.msk.f32.vlgmr.msra.gmra.mxu0 %vm730_vm1, %v992_v51 }
 0x752   : > { %v1339_v53 = vpop.f32.mrf.mxu0 }
 0x753   : > { %v1080_v54 = vadd.f32 %v1339_v53, %v1280_v52 }
 0x754   : > { %v1074_v55 = vpop.f32.mrf.mxu0 }
 0x755   : > { %v1084_v56 = vadd.f32 %v1080_v54, %v2022_v1  ;;  %v1075_v57 = vadd.f32 %v1280_v52, %v1074_v55 }
 0x757   : > { %1086 = vst.msk [vmem:[%s576_s7 + $0x8] sm:$0xff] %vm590_vm0, %v1084_v56  ;;  %v1083_v58 = vadd.f32 %v1075_v57, %v2020_v0 }
 0x759   : > { %1085 = vst.msk [vmem:[%s576_s7] sm:$0xff] %vm590_vm0, %v1083_v58 }
 0x75a   : > { %1660 = shalt.err (!%p1657_p6)
}
 0x75b   : > { %s1661_s22 = scalar_lea.hbm %s2090_s14, 256  ;;  %s1665_s6 = scalar_lea.hbm %s2189_s27, 512 }
 0x75c   : > { %p1662_p4 = scmp.ne.s32.totalorder %s2090_s14, %s1661_s22  ;;  %p1666_p12 = scmp.lt.s32.totalorder %s2090_s14, %s2189_s27 }
 0x75d   : > { %p1667_p0 = scmp.lt.s32.totalorder %s1665_s6, %s1661_s22 }
 0x75e   : > { %p1663_p1 = pnand %p1662_p4, %p2190_p5 }
 0x75f   : > { %p1668_p13 = por %p1667_p0, %p1666_p12 }
 0x760   : > { %p1664_p9 = pneg %p1663_p1 }
 0x762   : > { %p1669_p2 = pnand %p1668_p13, %p1664_p9 }
 0x764   : > { %1672 = shalt.err (!%p1669_p2)
}
 0x765   : > { %s1735_s18 = smov 128   ;;  %s1736_s23 = smov 8  }
 0x766   : > { %1366 = dma.vmem_to_hbm [thread:$0]  (%p2190_p5), %s2092_s20, 256, %s2090_s14, %s1088_s19, %s1735_s18, %s1735_s18, %s1736_s23  }
 0x767 PF: > { %s1116_s2 = sand.u32 1, %s1711_s29   ;;  %p2191_p8 = scmp.ne.s32.totalorder %s2179_s24, 0 }
 0x768   : > { %p2192_p7 = scmp.ge.s32.totalorder %s1723_s16, 2  ;;  %s1117_s9 = scalar_lea.sflag [#allocation4], %s1116_s2 }
 0x76a   : > { %p1392_p11 = pnand %p2192_p7, %p2191_p8 }
 0x76c   : > { %p1393_p10 = pneg %p1392_p11 }
 0x76e   : > { %1706 = dma.done.wait (%p1393_p10), %s1117_s9, 256  }
 0x76f   : > { %1708 = vsyncadd (%p1393_p10), %s1117_s9, 4294967040  ;;  %s2193_s21 = sld [smem:[#allocation20_spill]]  ;;  %p30_p3 = scmp.ge.s32.totalorder %s1920_s25, 4  }
 0x770   : > { %s2194_s29 = smov %s1715_s30  ;;  %s2195_s30 = smov %s1719_s15 }
 0x771   : > { %s2197_s16 = smov %s1920_s25  ;;  %32 = sbr.rel (!%p30_p3) target bundleno = 16 (0x10), region = 148 }
 0x775   : > { %s2196_s15 = smov %s2193_s21 }
 0x776   :  { %1122 = vsyncpa [#allocation3], 1 }
 0x777   :  { %1124 = vsyncpa [#allocation3 + $0x1], 1 }
 0x778   :  { %1125 = vsyncpa [#allocation6], 1 }
 0x779   :  { %1126 = vsyncpa [#allocation9], 1 }
 0x77a   :  { %1127 = vsyncpa [#allocation12], 1 }
 0x77b   :  { %1128 = vsyncpa [#allocation4], 1 }
 0x77c   :  { %1130 = vsyncpa [#allocation4 + $0x1], 1 }

// kernel: tpu_custom_call.1
= control target key start
LH: loop header
LB: loop body
LE: loop exit
PB: predicated region body
PF: predicated region fallthrough
CT: control target
= control target key end

     0   :  { %s2138_s0 = inlined_call_operand.vmem [shape: f32[32,32], index: 0, kind: input, shape index: {}]   ;;  %s2139_s1 = inlined_call_operand.hbm [shape: f32[2,16,16], index: 1, kind: input, shape index: {}]   ;;  %s2140_s2 = inlined_call_operand.hbm [shape: f32[1,32], index: 2, kind: input, shape index: {}]   ;;  %s2141_s3 = inlined_call_operand.hbm [shape: f32[1,32], index: 3, kind: input, shape index: {}]   ;;  %s2142_s4 = inlined_call_operand.vmem [shape: f32[32,16], index: 4, kind: input, shape index: {}]   ;;  %s2143_s5 = inlined_call_operand.hbm [shape: f32[1,16], index: 5, kind: input, shape index: {}]   ;;  %s2144_s6 = inlined_call_operand.hbm [shape: f32[1,16], index: 6, kind: input, shape index: {}]   ;;  %s2145_s7 = inlined_call_operand.hbm [shape: f32[1,16], index: 7, kind: input, shape index: {}]   ;;  %s2146_s8 = inlined_call_operand.vmem [shape: f32[16,16], index: 8, kind: input, shape index: {}]   ;;  %s2147_s9 = inlined_call_operand.hbm [shape: f32[1,16], index: 9, kind: input, shape index: {}]   ;;  %s2148_s10 = inlined_call_operand.vmem [shape: f32[1,16], index: 10, kind: input, shape index: {}]   ;;  %s2149_s11 = inlined_call_operand.vmem [shape: f32[1,16], index: 11, kind: input, shape index: {}]   ;;  %s2150_s12 = inlined_call_operand.vmem [shape: f32[16,32], index: 12, kind: input, shape index: {}]   ;;  %s2151_s13 = inlined_call_operand.vmem [shape: f32[1,32], index: 13, kind: input, shape index: {}]   ;;  %s2152_s14 = inlined_call_operand.hbm [shape: f32[32,32], index: 14, kind: output, shape index: {}]  }
   0x1   :  { %2158 = sst [smem:[#allocation21_spill]] %s2140_s2 }
   0x2   :  { %2159 = sst [smem:[#allocation22_spill]] %s2141_s3 }
   0x3   :  { %2160 = sst [smem:[#allocation23_spill]] %s2143_s5 }
   0x4   :  { %2161 = sst [smem:[#allocation24_spill]] %s2144_s6 }
   0x5   :  { %2162 = sst [smem:[#allocation25_spill]] %s2145_s7 }
   0x6   :  { %2163 = sst [smem:[#allocation26_spill]] %s2147_s9 }
   0x7   :  { %2164 = sst [smem:[#allocation27_spill]] %s2152_s14 }
   0x8   :  { %19 = vsyncpa [#allocation3], 0 }
   0x9   :  { %21 = vsyncpa [#allocation3 + $0x1], 0 }
   0xa   :  { %22 = vsyncpa [#allocation6], 0 }
   0xb   :  { %23 = vsyncpa [#allocation9], 0 }
   0xc   :  { %24 = vsyncpa [#allocation12], 0 }
   0xd   :  { %25 = vsyncpa [#allocation4], 0 }
   0xe   :  { %27 = vsyncpa [#allocation4 + $0x1], 0  ;;  %s1812_s29 = smov 0   ;;  %s1814_s30 = smov 0  }
   0xf   :  { %s1816_s15 = smov 0   ;;  %s1818_s16 = smov 0  }
  0x10 LB: > { %s1725_s17 = smov [#allocation5]   ;;  %s1833_s19 = sadd.s32 4294967295, %s1723_s16   ;;  %s1723_s16 = sphi %s1818_s16, %s2197_s16   ;;  %s1719_s15 = sphi %s1816_s15, %s2196_s15   ;;  %s1715_s30 = sphi %s1814_s30, %s2195_s30   ;;  %s1711_s29 = sphi %s1812_s29, %s2194_s29  }
  0x11   : > { %s381_s18 = sshll.u32 %s1725_s17, 4  ;;  %p1244_p0 = scmp.ge.s32.totalorder %s1723_s16, 1  ;;  %s382_s18 = int_to_ptr.vmem [resolvable:$true] %s381_s18 }
  0x12   : > { %p2154_p1 = scmp.eq.s32.totalorder %s1833_s19, 0  ;;  %p368_p2 = scmp.lt.s32.totalorder %s1723_s16, 3 }
  0x13   : > { %s1726_s21 = smov [#allocation8]   ;;  %s1727_s23 = smov [#allocation11]  }
  0x14   : > { %p1838_p3 = pnand %p1244_p0, %p368_p2  ;;  %s406_s22 = sshll.u32 %s1726_s21, 4  ;;  %s1845_s22 = int_to_ptr.vmem [resolvable:$true] %s406_s22 }
  0x15   : > { %s428_s24 = sshll.u32 %s1727_s23, 4  ;;  %s1728_s26 = smov [#allocation7]   ;;  %s1853_s24 = int_to_ptr.vmem [resolvable:$true] %s428_s24 }
  0x16   : > { %s2165_s20 = scalar_select %p1838_p3, 1, 0 }
  0x17   : > { %p1368_p5 = pneg %p1838_p3  ;;  %s1855_s27 = sshll.u32 %s1728_s26, 4  ;;  %s393_s27 = int_to_ptr.vmem [resolvable:$true] %s1855_s27 }
  0x18   : > { %s1474_s17 = scalar_lea.vmem %s382_s18, 16  ;;  %s1481_s21 = scalar_lea.vmem %s382_s18, 32 }
  0x19   : > { %p1849_p6 = pnand %p1368_p5, %p2154_p1  ;;  %p1475_p8 = scmp.ne.s32.totalorder %s382_s18, %s1474_s17 }
  0x1a   : > { %p1482_p11 = scmp.lt.s32.totalorder %s382_s18, %s382_s18  ;;  %p1483_p12 = scmp.lt.s32.totalorder %s1481_s21, %s1474_s17 }
  0x1b   : > { %p1859_p7 = pneg %p1849_p6 }
  0x1c   : > { %p1484_p13 = por %p1483_p12, %p1482_p11 }
  0x1d   : > { %p1477_p9 = pnand %p1475_p8, %p1859_p7 }
  0x1f   : > { %p1478_p10 = pneg %p1477_p9 }
  0x21   : > { %p1485_p0 = pnand %p1484_p13, %p1478_p10 }
  0x23   : > { %1488 = shalt.err (!%p1485_p0)
}
  0x24   : > { %s2168_s2 = sld [smem:[#allocation21_spill]]  ;;  %s1500_s14 = scalar_lea.vmem %s1845_s22, 16 }
  0x25   : > { %p1501_p2 = scmp.ne.s32.totalorder %s1845_s22, %s1500_s14  ;;  %s1507_s17 = scalar_lea.vmem %s1845_s22, 32 }
  0x26   : > { %p1508_p9 = scmp.lt.s32.totalorder %s1845_s22, %s1845_s22  ;;  %p1509_p10 = scmp.lt.s32.totalorder %s1507_s17, %s1500_s14 }
  0x27   : > { %p1503_p5 = pnand %p1501_p2, %p1859_p7 }
  0x28   : > { %p1510_p11 = por %p1509_p10, %p1508_p9 }
  0x29   : > { %p1504_p8 = pneg %p1503_p5 }
  0x2a   : > { %1371 = dma.hbm_to_vmem [thread:$0]  (!%p1849_p6), %s2168_s2, 16, %s382_s18, [#allocation6]  }
  0x2b   : > { %p1511_p12 = pnand %p1510_p11, %p1504_p8 }
  0x2d   : > { %1514 = shalt.err (!%p1511_p12)
}
  0x2e   : > { %s2169_s5 = sld [smem:[#allocation23_spill]]  ;;  %s1526_s18 = scalar_lea.vmem %s1853_s24, 16 }
  0x2f   : > { %p1527_p13 = scmp.ne.s32.totalorder %s1853_s24, %s1526_s18  ;;  %s1533_s14 = scalar_lea.vmem %s1853_s24, 32 }
  0x30   : > { %p1534_p5 = scmp.lt.s32.totalorder %s1853_s24, %s1853_s24  ;;  %p1535_p8 = scmp.lt.s32.totalorder %s1533_s14, %s1526_s18 }
  0x31   : > { %p1529_p0 = pnand %p1527_p13, %p1859_p7 }
  0x32   : > { %p1536_p9 = por %p1535_p8, %p1534_p5 }
  0x33   : > { %p1530_p2 = pneg %p1529_p0 }
  0x34   : > { %1377 = dma.hbm_to_vmem [thread:$0]  (!%p1849_p6), %s2169_s5, 16, %s1845_s22, [#allocation9]  }
  0x35   : > { %p1537_p10 = pnand %p1536_p9, %p1530_p2 }
  0x37   : > { %1540 = shalt.err (!%p1537_p10)
}
  0x38   : > { %s2170_s7 = sld [smem:[#allocation25_spill]]  ;;  %s1729_s22 = smov [#allocation10]  }
  0x39   : > { %s417_s21 = sshll.u32 %s1729_s22, 4  ;;  %s1552_s23 = scalar_lea.vmem %s393_s27, 16  ;;  %s418_s21 = int_to_ptr.vmem [resolvable:$true] %s417_s21 }
  0x3a   : > { %p1553_p11 = scmp.ne.s32.totalorder %s393_s27, %s1552_s23  ;;  %s1559_s18 = scalar_lea.vmem %s393_s27, 32 }
  0x3b   : > { %p1560_p0 = scmp.lt.s32.totalorder %s393_s27, %s393_s27  ;;  %p1561_p2 = scmp.lt.s32.totalorder %s1559_s18, %s1552_s23 }
  0x3c   : > { %p1555_p12 = pnand %p1553_p11, %p1859_p7 }
  0x3d   : > { %p1562_p5 = por %p1561_p2, %p1560_p0 }
  0x3e   : > { %1383 = dma.hbm_to_vmem [thread:$0]  (!%p1849_p6), %s2170_s7, 16, %s1853_s24, [#allocation12]  }
  0x3f   : > { %p1556_p13 = pneg %p1555_p12 }
  0x41   : > { %p1563_p8 = pnand %p1562_p5, %p1556_p13 }
  0x43   : > { %1566 = shalt.err (!%p1563_p8)
}
  0x44   : > { %s2171_s3 = sld [smem:[#allocation22_spill]]  ;;  %s1578_s24 = scalar_lea.vmem %s418_s21, 16 }
  0x45   : > { %p1579_p9 = scmp.ne.s32.totalorder %s418_s21, %s1578_s24  ;;  %s1585_s17 = scalar_lea.vmem %s418_s21, 32 }
  0x46   : > { %p1586_p12 = scmp.lt.s32.totalorder %s418_s21, %s418_s21  ;;  %p1587_p4 = scmp.lt.s32.totalorder %s1585_s17, %s1578_s24 }
  0x47   : > { %p1581_p10 = pnand %p1579_p9, %p1859_p7 }
  0x48   : > { %p1588_p1 = por %p1587_p4, %p1586_p12 }
  0x49   : > { %p1582_p11 = pneg %p1581_p10 }
  0x4a   : > { %1374 = dma.hbm_to_vmem [thread:$0]  (!%p1849_p6), %s2171_s3, 16, %s393_s27, [#allocation6]  }
  0x4b   : > { %p1589_p0 = pnand %p1588_p1, %p1582_p11 }
  0x4d   : > { %1592 = shalt.err (!%p1589_p0)
}
  0x4e   : > { %s2172_s6 = sld [smem:[#allocation24_spill]]  ;;  %s1730_s27 = smov [#allocation13]  }
  0x4f   : > { %s442_s18 = sshll.u32 %s1730_s27, 4  ;;  %s443_s18 = int_to_ptr.vmem [resolvable:$true] %s442_s18 }
  0x50   : > { %s1604_s14 = scalar_lea.vmem %s443_s18, 16  ;;  %s1611_s26 = scalar_lea.vmem %s443_s18, 32 }
  0x51   : > { %p1605_p13 = scmp.ne.s32.totalorder %s443_s18, %s1604_s14  ;;  %p1612_p8 = scmp.lt.s32.totalorder %s443_s18, %s443_s18 }
  0x52   : > { %p1613_p4 = scmp.lt.s32.totalorder %s1611_s26, %s1604_s14 }
  0x53   : > { %p1607_p2 = pnand %p1605_p13, %p1859_p7 }
  0x54   : > { %1380 = dma.hbm_to_vmem [thread:$0]  (!%p1849_p6), %s2172_s6, 16, %s418_s21, [#allocation9]  }
  0x55   : > { %p1608_p5 = pneg %p1607_p2  ;;  %p1614_p1 = por %p1613_p4, %p1612_p8 }
  0x57   : > { %p1615_p9 = pnand %p1614_p1, %p1608_p5 }
  0x59   : > { %1618 = shalt.err (!%p1615_p9)
}
  0x5a   : > { %s2173_s9 = sld [smem:[#allocation26_spill]]  ;;  %s1243_s28 = sadd.s32 4294967294, %s1723_s16  }
  0x5b   : > { %s1920_s25 = sadd.s32 1, %s1723_s16   ;;  %s66_s22 = sadd.s32 1, %s1719_s15 }
  0x5c   : > { %s63_s21 = ssub.s32 %s1723_s16, %s1920_s25  ;;  %p73_p10 = scmp.ne.s32.totalorder %s1719_s15, %s1715_s30 }
  0x5d   : > { %p64_p7 = scmp.eq.s32.totalorder %s63_s21, 0  ;;  %p74_p11 = scmp.eq.s32.totalorder %s1723_s16, 0 }
  0x5e   : > { %p79_p12 = scmp.ne.s32.totalorder %s1715_s30, %s1711_s29  ;;  %p2176_p13 = scmp.eq.s32.totalorder %s1833_s19, 0 }
  0x5f   : > { %s1931_s23 = scalar_select %p64_p7, %s1719_s15, %s66_s22  }
  0x60   : > { %1386 = dma.hbm_to_vmem [thread:$0]  (!%p1849_p6), %s2173_s9, 16, %s443_s18, [#allocation12]  }
  0x61   : > { %2174 = sst [smem:[#allocation20_spill]] %s1931_s23  ;;  %p1933_p0 = por %p74_p11, %p73_p10 }
  0x62   : > { %p1939_p6 = por %p2176_p13, %p79_p12  ;;  %p355_p2 = scmp.eq.s32.totalorder %s1833_s19, 1 }
  0x63   : > { %p361_p5 = scmp.eq.s32.totalorder %s1243_s28, 1  ;;  %p1401_p8 = scmp.lt.s32.totalorder %s1723_s16, 2 }
  0x64   : > { %s2177_s18 = scalar_select %p1939_p6, 1, 0 }
  0x65   : > { %s474_s14 = sand.u32 1, %s1719_s15   ;;  %p1946_p4 = por %p355_p2, %p73_p10 }
  0x66   : > { %p1950_p1 = por %p361_p5, %p79_p12  ;;  %s1252_s17 = sshll.u32 %s474_s14, 4 }
  0x67   : > { %s2178_s26 = scalar_select %p1946_p4, 1, 0 }
  0x68   : > { %s2179_s24 = scalar_select %p1950_p1, 1, 0 }
  0x69   : > { %s1288_s21 = sshll.u32 %s1723_s16, 8  ;;  %s478_s28 = scalar_lea.vmem [#allocation2], %s1252_s17 }
  0x6a   : > { %s1958_s3 = scalar_lea.hbm %s2139_s1, %s1288_s21  ;;  %s485_s5 = sshll.u32 %s478_s28, 4  ;;  %s1960_s5 = int_to_ptr.vmem [resolvable:$true] %s485_s5 }
  0x6b   : > { %p1964_p9 = pnand %p1401_p8, %p1933_p0  ;;  %s1968_s7 = scalar_lea.sflag [#allocation3], %s474_s14 }
  0x6c   : > { %s1619_s9 = scalar_lea.hbm %s1958_s3, 256  ;;  %s1624_s17 = scalar_lea.hbm %s2139_s1, 512 }
  0x6d   : > { %p1620_p7 = scmp.ne.s32.totalorder %s1958_s3, %s1619_s9  ;;  %p1621_p10 = pneg %p1964_p9 }
  0x6e   : > { %p1625_p0 = scmp.lt.s32.totalorder %s1958_s3, %s2139_s1  ;;  %p1626_p13 = scmp.lt.s32.totalorder %s1624_s17, %s1619_s9 }
  0x6f   : > { %p1622_p11 = pnand %p1621_p10, %p1620_p7 }
  0x70   : > { %p1627_p2 = por %p1626_p13, %p1625_p0 }
  0x71   : > { %p1623_p12 = pneg %p1622_p11 }
  0x73   : > { %p1628_p5 = pnand %p1627_p2, %p1623_p12 }
  0x75   : > { %1631 = shalt.err (!%p1628_p5)
}
  0x76   : > { %s1632_s27 = scalar_lea.vmem %s1960_s5, 256  ;;  %s1731_s14 = smov [#allocation2]  }
  0x77   : > { %p1633_p8 = scmp.ne.s32.totalorder %s1960_s5, %s1632_s27  ;;  %s1637_s23 = sshll.u32 %s1731_s14, 4  ;;  %s1638_s23 = int_to_ptr.vmem [resolvable:$false] %s1637_s23 }
  0x78   : > { %s1639_s2 = scalar_lea.vmem %s1638_s23, 512  ;;  %p1640_p11 = scmp.lt.s32.totalorder %s1960_s5, %s1638_s23 }
  0x79   : > { %p1635_p1 = pnand %p1633_p8, %p1621_p10  ;;  %p1641_p4 = scmp.lt.s32.totalorder %s1639_s2, %s1632_s27 }
  0x7b   : > { %p1636_p7 = pneg %p1635_p1  ;;  %p1642_p6 = por %p1641_p4, %p1640_p11 }
  0x7d   : > { %p1643_p3 = pnand %p1642_p6, %p1636_p7 }
  0x7f   : > { %1646 = shalt.err (!%p1643_p3)
}
  0x80   : > { %s1732_s9 = smov 128   ;;  %s1733_s21 = smov 8  }
  0x81   : > { %1390 = dma.hbm_to_vmem [thread:$0]  (!%p1964_p9), %s1958_s3, 256, %s1960_s5, %s1968_s7, %s1732_s9, %s1732_s9, %s1733_s21  }
  0x82   : > { %p2181_p10 = scmp.ne.s32.totalorder %s2165_s20, 0 }
  0x83   : > { %s1992_s17 = sand.u32 (!%p2181_p10), 1, %s1715_s30   ;;  %p2182_p3 = scmp.ne.s32.totalorder (!%p2181_p10), %s2177_s18, 0 }
  0x84   : > { %497 = sbr.rel (%p2181_p10) target bundleno = 1895 (0x767), region = 76  ;;  %s1256_s23 = sshll.u32 (!%p2181_p10), %s1992_s17, 4 }
  0x85   : > { %s500_s22 = scalar_lea.sflag (!%p2181_p10), [#allocation3], %s1992_s17  ;;  %s1998_s28 = scalar_lea.vmem (!%p2181_p10), [#allocation2], %s1256_s23 }
  0x89   : > { %1690 = dma.done.wait (%p2182_p3), %s500_s22, 256  }
  0x8a   : > { %1692 = vsyncadd (%p2182_p3), %s500_s22, 4294967040  ;;  %p2183_p6 = scmp.eq.s32.totalorder %s1833_s19, 0 }
  0x8c   : > { %1694 = dma.done.wait (%p2183_p6), [#allocation6], 32   ;;  %p2184_p4 = pmov %p2183_p6 }
  0x8e   : > { %1696 = vsyncadd (%p2184_p4), [#allocation6], 4294967264  ;;  %p2185_p1 = pmov %p2184_p4 }
  0x90   : > { %1698 = dma.done.wait (%p2185_p1), [#allocation9], 32   ;;  %p2186_p9 = pmov %p2185_p1 }
  0x91   : > { %p2187_p12 = pmov %p2185_p1 }
  0x92   : > { %1700 = vsyncadd (%p2186_p9), [#allocation9], 4294967264 }
  0x93   : > { %1702 = dma.done.wait (%p2187_p12), [#allocation12], 32   ;;  %p2188_p0 = pmov %p2185_p1 }
  0x94   : > { %s1264_s3 = sshll.u32 %s1833_s19, 1  ;;  %vm590_vm0 = vcmask 261120   ;;  %v639_v14 = vld [vmem:[%s2142_s4 + $0x18] sm:$0xff]  ;;  %v638_v15 = vld [vmem:[%s2142_s4 + $0x10] sm:$0xff]  ;;  %v637_v16 = vld [vmem:[%s2142_s4 + $0x8] sm:$0xff]  ;;  %vm730_vm1 = vcmask 130048  }
  0x95   : > { %1704 = vsyncadd (%p2188_p0), [#allocation12], 4294967264  ;;  %p578_p13 = scmp.lt.s32.totalorder %s1264_s3, 3  ;;  %1308 = vmatprep.subr.mxu0 %v639_v14  ;;  %v636_v17 = vld [vmem:[%s2142_s4] sm:$0xff]  ;;  %v777_v53 = vld [vmem:[%s2146_s8 + $0x8] sm:$0xff]  ;;  %s1289_s6 = sshll.u32 %s1833_s19, 8 }
  0x96   : > { %1309 = vmatpush3.msra.mxu0 %v639_v14  ;;  %v1266_v24 = vld [vmem:[#allocation5] ss:$0 sm:$0xff]  ;;  %v1267_v27 = vld [vmem:[#allocation7] ss:$0 sm:$0xff]  ;;  %v1268_v36 = vld [vmem:[#allocation8] ss:$0 sm:$0xff]  ;;  %1319 = vmatprep.subr.mxu1 %v777_v53 }
  0x97   : > { %s2199_s3 = smov (!%p578_p13, %s1264_s3), 3  ;;  %1310 = vmatprep.subr.mxu0 %v638_v15  ;;  %v776_v54 = vld [vmem:[%s2146_s8] sm:$0xff]  ;;  %1320 = vmatpush3.msra.mxu1 %v777_v53  ;;  %v587_v14 = vld [vmem:[%s1998_s28 + $0x8] sm:$0xff]  ;;  %s576_s7 = scalar_lea.vmem [#allocation14], %s1256_s23 }
  0x98   : > { %s1265_s5 = sshll.u32 %s2199_s3, 3  ;;  %1311 = vmatpush3.msra.mxu0 %v638_v15  ;;  %1321 = vmatprep.subr.mxu1 %v776_v54  ;;  %v1271_v61 = vld [vmem:[#allocation10] ss:$0 sm:$0xff]  ;;  %v1275_v15 = vld [vmem:[#allocation13] ss:$0 sm:$0xff]  ;;  %s2189_s27 = sld [smem:[#allocation27_spill]] }
  0x99   : > { %s581_s20 = scalar_lea.vmem %s2138_s0, %s1265_s5  ;;  %1312 = vmatprep.subr.mxu0 %v637_v16  ;;  %1322 = vmatpush3.msra.mxu1 %v776_v54  ;;  %s1088_s19 = scalar_lea.sflag [#allocation4], %s1992_s17 }
  0x9a   : > { %v2020_v0 = vld [vmem:[%s581_s20] sm:$0xff]  ;;  %v2022_v1 = vld [vmem:[%s581_s20 + $0x8] sm:$0xff]  ;;  %1313 = vmatpush3.msra.mxu0 %v637_v16  ;;  %s1101_s20 = sshll.u32 %s576_s7, 4  ;;  %p2190_p5 = scmp.ne.s32.totalorder %s2178_s26, 0  ;;  %s2092_s20 = int_to_ptr.vmem [resolvable:$true] %s1101_s20 }
  0x9b   : > { %v591_v2 = vsel %vm590_vm0, %v2020_v0, 0.0  ;;  %v594_v3 = vsel %vm590_vm0, %v2022_v1, 0.0  ;;  %1314 = vmatprep.subr.mxu0 %v636_v17  ;;  %s1647_s23 = scalar_lea.vmem %s2092_s20, 256  ;;  %s1734_s2 = smov [#allocation14]  }
  0x9c   : > { %592 = vadd.xlane.f32.xlu0 %v591_v2  ;;  %1315 = vmatpush3.msra.mxu0 %v636_v17  ;;  %p1648_p2 = scmp.ne.s32.totalorder %s2092_s20, %s1647_s23  ;;  %s1651_s9 = sshll.u32 %s1734_s2, 4  ;;  %s1652_s9 = int_to_ptr.vmem [resolvable:$false] %s1651_s9 }
  0x9d   : > { %s1653_s21 = scalar_lea.vmem %s1652_s9, 512  ;;  %p1654_p11 = scmp.lt.s32.totalorder %s2092_s20, %s1652_s9 }
  0x9e   : > { %s2090_s14 = scalar_lea.hbm %s2189_s27, %s1289_s6  ;;  %p1649_p8 = pnand %p1648_p2, %p2190_p5 }
  0x9f   : > { %p1655_p10 = scmp.lt.s32.totalorder %s1653_s21, %s1647_s23 }
  0xa0   : > { %595 = vadd.xlane.f32.xlu0 %v594_v3  ;;  %v1272_v3 = vld [vmem:[#allocation11] ss:$0 sm:$0xff]  ;;  %p1650_p7 = pneg %p1649_p8 }
  0xa1   : > { %p1656_p3 = por %p1655_p10, %p1654_p11 }
  0xa3   : > { %p1657_p6 = pnand %p1656_p3, %p1650_p7 }
 0x125   : > { %v593_v4 = vpop.xlane.xlu0 %592 }
 0x126   : > { %v598_v5 = vmul.f32 0.03125, %v593_v4 }
 0x128   : > { %v600_v6 = vsub.f32 %v2020_v0, %v598_v5 }
 0x129   : > { %v596_v7 = vpop.xlane.xlu0 %595 }
 0x12a   : > { %v599_v8 = vmul.f32 0.03125, %v596_v7  ;;  %v602_v9 = vmul.f32 %v600_v6, %v600_v6 }
 0x12c   : > { %v601_v10 = vsub.f32 %v2022_v1, %v599_v8  ;;  %v604_v11 = vsel %vm590_vm0, %v602_v9, 0.0 }
 0x12d   : > { %605 = vadd.xlane.f32.xlu1 %v604_v11  ;;  %v586_v11 = vld [vmem:[%s1998_s28] sm:$0xff] }
 0x12e   : > { %v603_v12 = vmul.f32 %v601_v10, %v601_v10 }
 0x130   : > { %v607_v13 = vsel %vm590_vm0, %v603_v12, 0.0 }
 0x131   : > { %608 = vadd.xlane.f32.xlu1 %v607_v13 }
 0x1b6   : > { %v606_v18 = vpop.xlane.xlu1 %605 }
 0x1b7   : > { %v610_v19 = vmul.f32 0.03125, %v606_v18 }
 0x1b9   : > { %v612_v20 = vadd.f32 1e-12, %v610_v19 }
 0x1ba   : > { %v609_v21 = vpop.xlane.xlu1 %608 }
 0x1bb   : > { %1451 = vrsqrt.f32 %v612_v20  ;;  %v611_v22 = vmul.f32 0.03125, %v609_v21 }
 0x1bd   : > { %v613_v23 = vadd.f32 1e-12, %v611_v22 }
 0x1bf   : > { %1453 = vrsqrt.f32 %v613_v23 }
 0x1c8   : > { %v1452_v25 = vpop.eup %1451 }
 0x1c9   : > { %v622_v26 = vmul.f32 %v1452_v25, %v1266_v24 }
 0x1cb   : > { %v624_v28 = vmul.f32 %v622_v26, %v600_v6 }
 0x1cc   : > { %v1454_v29 = vpop.eup %1453 }
 0x1cd   : > { %v623_v30 = vmul.f32 %v1454_v29, %v1266_v24  ;;  %v632_v31 = vadd.f32 %v1267_v27, %v624_v28 }
 0x1cf   : > { %v625_v32 = vmul.f32 %v623_v30, %v601_v10  ;;  %v634_v33 = vmax.f32 %v632_v31, 0.0 }
 0x1d1   : > { %v633_v34 = vadd.f32 %v1267_v27, %v625_v32  ;;  %1316 = vmatprep.mubr.msk.f32.mxu0 %vm590_vm0, %v634_v33  ;;  %v994_v32 = vld [vmem:[%s2150_s12 + $0x8] sm:$0xff]  ;;  %v993_v33 = vld [vmem:[%s2150_s12] sm:$0xff] }
 0x1d2   : > { %1333 = vmatprep.subr.mxu0 %v994_v32 }
 0x1d3   : > { %v635_v35 = vmax.f32 %v633_v34, 0.0 }
 0x1d5   : > { %1317 = vmatmul.mubr.msk.f32.vlgmr.msra.gmra.mxu0 %vm590_vm0, %v635_v35 }
 0x1d6   : > { %1334 = vmatpush3.msra.mxu0 %v994_v32 }
 0x1d7   : > { %1335 = vmatprep.subr.mxu0 %v993_v33 }
 0x1d8   : > { %1336 = vmatpush3.msra.mxu0 %v993_v33 }
 0x295   : > { %v1318_v37 = vpop.f32.mrf.mxu0 }
 0x296   : > { %v725_v38 = vadd.f32 %v1318_v37, %v1268_v36 }
 0x297   : > { %v719_v39 = vpop.f32.mrf.mxu0 }
 0x298   : > { %v720_v40 = vadd.f32 %v1268_v36, %v719_v39  ;;  %v734_v41 = vsel %vm730_vm1, %v725_v38, 0.0 }
 0x299   : > { %735 = vadd.xlane.f32.xlu1 %v734_v41 }
 0x29a   : > { %v731_v42 = vsel %vm730_vm1, %v720_v40, 0.0 }
 0x29b   : > { %732 = vadd.xlane.f32.xlu0 %v731_v42 }
 0x322   : > { %v736_v43 = vpop.xlane.xlu1 %735 }
 0x323   : > { %v739_v44 = vmul.f32 0.0625, %v736_v43 }
 0x324   : > { %v733_v45 = vpop.xlane.xlu0 %732 }
 0x325   : > { %v741_v46 = vsub.f32 %v725_v38, %v739_v44  ;;  %v738_v47 = vmul.f32 0.0625, %v733_v45  ;;  %v1279_v44 = vld [vmem:[%s2149_s11] ss:$0 sm:$0xff] }
 0x327   : > { %v740_v48 = vsub.f32 %v720_v40, %v738_v47  ;;  %v743_v49 = vmul.f32 %v741_v46, %v741_v46  ;;  %v1278_v40 = vld [vmem:[%s2148_s10] ss:$0 sm:$0xff] }
 0x329   : > { %v747_v50 = vsel %vm730_vm1, %v743_v49, 0.0  ;;  %v742_v51 = vmul.f32 %v740_v48, %v740_v48 }
 0x32a   : > { %748 = vadd.xlane.f32.xlu1 %v747_v50 }
 0x32b   : > { %v744_v52 = vsel %vm730_vm1, %v742_v51, 0.0 }
 0x32c   : > { %745 = vadd.xlane.f32.xlu0 %v744_v52  ;;  %v1280_v52 = vld [vmem:[%s2151_s13] ss:$0 sm:$0xff] }
 0x3b3   : > { %v749_v55 = vpop.xlane.xlu1 %748 }
 0x3b4   : > { %v751_v56 = vmul.f32 0.0625, %v749_v55 }
 0x3b5   : > { %v746_v57 = vpop.xlane.xlu0 %745 }
 0x3b6   : > { %v753_v58 = vadd.f32 1e-12, %v751_v56  ;;  %v750_v59 = vmul.f32 0.0625, %v746_v57 }
 0x3b8   : > { %1455 = vrsqrt.f32 %v753_v58  ;;  %v752_v60 = vadd.f32 1e-12, %v750_v59 }
 0x3ba   : > { %1457 = vrsqrt.f32 %v752_v60 }
 0x3c5   : > { %v1456_v62 = vpop.eup %1455 }
 0x3c6   : > { %v763_v63 = vmul.f32 %v1456_v62, %v1271_v61 }
 0x3c7   : > { %v1458_v2 = vpop.eup %1457 }
 0x3c8   : > { %v762_v4 = vmul.f32 %v1458_v2, %v1271_v61  ;;  %v765_v5 = vmul.f32 %v763_v63, %v741_v46 }
 0x3ca   : > { %v764_v6 = vmul.f32 %v762_v4, %v740_v48  ;;  %v773_v7 = vadd.f32 %v1272_v3, %v765_v5 }
 0x3cc   : > { %v772_v8 = vadd.f32 %v1272_v3, %v764_v6  ;;  %v775_v10 = vmax.f32 %v773_v7, 0.0 }
 0x3ce   : > { %v774_v9 = vmax.f32 %v772_v8, 0.0 }
 0x3d0   : > { %1323 = vmatprep.mubr.msk.f32.mxu1 %vm730_vm1, %v774_v9 }
 0x3d1   : > { %1324 = vmatmul.mubr.msk.f32.vlgmr.msra.gmra.mxu1 %vm730_vm1, %v775_v10 }
 0x3d2   : > { %1330 = vmatprep.mubr.msk.f32.mxu1 %vm730_vm1, %v586_v11 }
 0x491   : > { %v1325_v12 = vpop.f32.mrf.mxu1 }
 0x492   : > { %1326 = vmatprep.subr.mxu1 %v1325_v12 }
 0x493   : > { %v850_v13 = vpop.f32.mrf.mxu1  ;;  %1327 = vmatpush3.msra.mxu1 %v1325_v12 }
 0x494   : > { %1328 = vmatprep.subr.mxu1 %v850_v13 }
 0x495   : > { %1329 = vmatpush3.msra.mxu1 %v850_v13 }
 0x496   : > { %1331 = vmatmul.mubr.msk.f32.vlgmr.msra.gmra.mxu1 %vm730_vm1, %v587_v14 }
 0x556   : > { %v1332_v16 = vpop.f32.mrf.mxu1 }
 0x557   : > { %v944_v17 = vadd.f32 %v1332_v16, %v1275_v15 }
 0x558   : > { %v938_v18 = vpop.f32.mrf.mxu1 }
 0x559   : > { %v939_v19 = vadd.f32 %v1275_v15, %v938_v18  ;;  %v952_v20 = vsel %vm730_vm1, %v944_v17, 0.0 }
 0x55a   : > { %953 = vadd.xlane.f32.xlu1 %v952_v20 }
 0x55b   : > { %v949_v21 = vsel %vm730_vm1, %v939_v19, 0.0 }
 0x55c   : > { %950 = vadd.xlane.f32.xlu0 %v949_v21 }
 0x5e3   : > { %v954_v22 = vpop.xlane.xlu1 %953 }
 0x5e4   : > { %v956_v23 = vmul.f32 0.0625, %v954_v22 }
 0x5e5   : > { %v951_v24 = vpop.xlane.xlu0 %950 }
 0x5e6   : > { %v958_v25 = vsub.f32 %v944_v17, %v956_v23  ;;  %v955_v26 = vmul.f32 0.0625, %v951_v24 }
 0x5e8   : > { %v957_v27 = vsub.f32 %v939_v19, %v955_v26  ;;  %v960_v28 = vmul.f32 %v958_v25, %v958_v25 }
 0x5ea   : > { %v964_v29 = vsel %vm730_vm1, %v960_v28, 0.0  ;;  %v959_v30 = vmul.f32 %v957_v27, %v957_v27 }
 0x5eb   : > { %965 = vadd.xlane.f32.xlu1 %v964_v29 }
 0x5ec   : > { %v961_v31 = vsel %vm730_vm1, %v959_v30, 0.0 }
 0x5ed   : > { %962 = vadd.xlane.f32.xlu0 %v961_v31 }
 0x674   : > { %v966_v34 = vpop.xlane.xlu1 %965 }
 0x675   : > { %v968_v35 = vmul.f32 0.0625, %v966_v34 }
 0x676   : > { %v963_v36 = vpop.xlane.xlu0 %962 }
 0x677   : > { %v970_v37 = vadd.f32 1e-12, %v968_v35  ;;  %v967_v38 = vmul.f32 0.0625, %v963_v36 }
 0x679   : > { %1459 = vrsqrt.f32 %v970_v37  ;;  %v969_v39 = vadd.f32 1e-12, %v967_v38 }
 0x67b   : > { %1461 = vrsqrt.f32 %v969_v39 }
 0x686   : > { %v1460_v41 = vpop.eup %1459 }
 0x687   : > { %v980_v42 = vmul.f32 %v1460_v41, %v1278_v40 }
 0x688   : > { %v1462_v43 = vpop.eup %1461 }
 0x689   : > { %v979_v45 = vmul.f32 %v1462_v43, %v1278_v40  ;;  %v982_v46 = vmul.f32 %v980_v42, %v958_v25 }
 0x68b   : > { %v981_v47 = vmul.f32 %v979_v45, %v957_v27  ;;  %v990_v48 = vadd.f32 %v1279_v44, %v982_v46 }
 0x68d   : > { %v989_v49 = vadd.f32 %v1279_v44, %v981_v47  ;;  %v992_v51 = vmax.f32 %v990_v48, 0.0 }
 0x68f   : > { %v991_v50 = vmax.f32 %v989_v49, 0.0 }
 0x691   : > { %1337 = vmatprep.mubr.msk.f32.mxu0 %vm730_vm1, %v991_v50 }
 0x692   : > { %1338 = vmatmul.mubr.msk.f32.vlgmr.msra.gmra.mxu0 %vm730_vm1, %v992_v51 }
 0x752   : > { %v1339_v53 = vpop.f32.mrf.mxu0 }
 0x753   : > { %v1080_v54 = vadd.f32 %v1339_v53, %v1280_v52 }
 0x754   : > { %v1074_v55 = vpop.f32.mrf.mxu0 }
 0x755   : > { %v1084_v56 = vadd.f32 %v1080_v54, %v2022_v1  ;;  %v1075_v57 = vadd.f32 %v1280_v52, %v1074_v55 }
 0x757   : > { %1086 = vst.msk [vmem:[%s576_s7 + $0x8] sm:$0xff] %vm590_vm0, %v1084_v56  ;;  %v1083_v58 = vadd.f32 %v1075_v57, %v2020_v0 }
 0x759   : > { %1085 = vst.msk [vmem:[%s576_s7] sm:$0xff] %vm590_vm0, %v1083_v58 }
 0x75a   : > { %1660 = shalt.err (!%p1657_p6)
}
 0x75b   : > { %s1661_s22 = scalar_lea.hbm %s2090_s14, 256  ;;  %s1665_s6 = scalar_lea.hbm %s2189_s27, 512 }
 0x75c   : > { %p1662_p4 = scmp.ne.s32.totalorder %s2090_s14, %s1661_s22  ;;  %p1666_p12 = scmp.lt.s32.totalorder %s2090_s14, %s2189_s27 }
 0x75d   : > { %p1667_p0 = scmp.lt.s32.totalorder %s1665_s6, %s1661_s22 }
 0x75e   : > { %p1663_p1 = pnand %p1662_p4, %p2190_p5 }
 0x75f   : > { %p1668_p13 = por %p1667_p0, %p1666_p12 }
 0x760   : > { %p1664_p9 = pneg %p1663_p1 }
 0x762   : > { %p1669_p2 = pnand %p1668_p13, %p1664_p9 }
 0x764   : > { %1672 = shalt.err (!%p1669_p2)
}
 0x765   : > { %s1735_s18 = smov 128   ;;  %s1736_s23 = smov 8  }
 0x766   : > { %1366 = dma.vmem_to_hbm [thread:$0]  (%p2190_p5), %s2092_s20, 256, %s2090_s14, %s1088_s19, %s1735_s18, %s1735_s18, %s1736_s23  }
 0x767 PF: > { %s1116_s2 = sand.u32 1, %s1711_s29   ;;  %p2191_p8 = scmp.ne.s32.totalorder %s2179_s24, 0 }
 0x768   : > { %p2192_p7 = scmp.ge.s32.totalorder %s1723_s16, 2  ;;  %s1117_s9 = scalar_lea.sflag [#allocation4], %s1116_s2 }
 0x76a   : > { %p1392_p11 = pnand %p2192_p7, %p2191_p8 }
 0x76c   : > { %p1393_p10 = pneg %p1392_p11 }
 0x76e   : > { %1706 = dma.done.wait (%p1393_p10), %s1117_s9, 256  }
 0x76f   : > { %1708 = vsyncadd (%p1393_p10), %s1117_s9, 4294967040  ;;  %s2193_s21 = sld [smem:[#allocation20_spill]]  ;;  %p30_p3 = scmp.ge.s32.totalorder %s1920_s25, 4  }
 0x770   : > { %s2194_s29 = smov %s1715_s30  ;;  %s2195_s30 = smov %s1719_s15 }
 0x771   : > { %s2197_s16 = smov %s1920_s25  ;;  %32 = sbr.rel (!%p30_p3) target bundleno = 16 (0x10), region = 148 }
 0x775   : > { %s2196_s15 = smov %s2193_s21 }
 0x776   :  { %1122 = vsyncpa [#allocation3], 1 }
 0x777   :  { %1124 = vsyncpa [#allocation3 + $0x1], 1 }
 0x778   :  { %1125 = vsyncpa [#allocation6], 1 }
 0x779   :  { %1126 = vsyncpa [#allocation9], 1 }
 0x77a   :  { %1127 = vsyncpa [#allocation12], 1 }
 0x77b   :  { %1128 = vsyncpa [#allocation4], 1 }
 0x77c   :  { %1130 = vsyncpa [#allocation4 + $0x1], 1 }

</bundles_post_ra>
